<compile_context>
chip_gen: v5e
topology: v5e:2x2
jax: 0.10.0
libtpu: 0.0.40
codegen_flags: <defaults>
</compile_context>

<pallas_src>
import numpy as np
import jax
import jax.numpy as jnp
from jax.experimental import pallas as pl
from jax.experimental.pallas import tpu as pltpu


def _round_up(x, m):
    return (x + m - 1) // m * m


# ----------------------------------------------------------------------------
# Pallas kernel: 4 matmuls + LeakyReLU per (joint, batch-tile) grid step
# ----------------------------------------------------------------------------
def _pfcnn_kernel(x_ref, w1_ref, b1_ref, w2_ref, b2_ref, w3_ref, b3_ref,
                  w4_ref, b4_ref, o_ref):
    def leaky(h):                       # f32 elementwise (free filler under MXU)
        return jnp.maximum(h, 0.1 * h)

    bf16 = jnp.bfloat16
    x = x_ref[0].astype(bf16)                                       # (TM, Cin)
    h = leaky(jnp.dot(x, w1_ref[0], preferred_element_type=jnp.float32)
              + b1_ref[0])
    h = leaky(jnp.dot(h.astype(bf16), w2_ref[0],
                      preferred_element_type=jnp.float32) + b2_ref[0])
    h = leaky(jnp.dot(h.astype(bf16), w3_ref[0],
                      preferred_element_type=jnp.float32) + b3_ref[0])
    o_ref[0] = (jnp.dot(h.astype(bf16), w4_ref[0],
                        preferred_element_type=jnp.float32) + b4_ref[0])


def parallel_factorize_cnn(x, params, out_dim, tm_target=256):
    """x: (N_B, N_J, in_channel) f32 -> (N_B, N_J, out_dim) f32.

    tm_target: batch tile (MXU M rows). 128 is plenty on v5e; 256-512 on
    v6e/v7x.  Small batches collapse to a single >=8-row tile.
    """
    N_B, N_J, C = x.shape
    w1, b1, w2, b2, w3, b3, w4, b4 = params
    out_pad = w4.shape[-1]

    tm = min(tm_target, _round_up(N_B, 8))
    NB_pad = _round_up(N_B, tm)

    xg = jnp.transpose(x, (1, 0, 2)).astype(jnp.float32)            # (N_J, N_B, C)
    if NB_pad != N_B:
        xg = jnp.pad(xg, ((0, 0), (0, NB_pad - N_B), (0, 0)))

    n_bt = NB_pad // tm
    grid = (N_J, n_bt)   # joint outer, batch-tile inner -> weights stay resident

    def wspec(arr):      # weights/biases: one joint per block, ignore batch axis
        return pl.BlockSpec((1,) + arr.shape[1:], lambda g, b: (g, 0, 0))

    x_spec = pl.BlockSpec((1, tm, C), lambda g, b: (g, b, 0))
    o_spec = pl.BlockSpec((1, tm, out_pad), lambda g, b: (g, b, 0))

    flops = 2 * NB_pad * N_J * sum(int(w.shape[1]) * int(w.shape[2])
                                   for w in (w1, w2, w3, w4))
    bytes_accessed = int(
        sum(int(a.size) * a.dtype.itemsize
            for a in (w1, b1, w2, b2, w3, b3, w4, b4))
        + int(xg.size) * 4 + N_J * NB_pad * out_pad * 4)

    out = pl.pallas_call(
        _pfcnn_kernel,
        out_shape=jax.ShapeDtypeStruct((N_J, NB_pad, out_pad), jnp.float32),
        grid=grid,
        in_specs=[x_spec, wspec(w1), wspec(b1), wspec(w2), wspec(b2),
                  wspec(w3), wspec(b3), wspec(w4), wspec(b4)],
        out_specs=o_spec,
        compiler_params=pltpu.CompilerParams(
            dimension_semantics=("parallel", "parallel"),
            vmem_limit_bytes=32 * 1024 * 1024),
        cost_estimate=pl.CostEstimate(flops=flops, transcendentals=0,
                                      bytes_accessed=bytes_accessed),
    )(xg, w1, b1, w2, b2, w3, b3, w4, b4)

    out = out[:, :N_B, :out_dim]                                    # drop padding
    return jnp.transpose(out, (1, 0, 2))                            # (N_B, N_J, D)


# ----------------------------------------------------------------------------
# Parameter setup glue (deterministic init + conv-transpose -> dense lowering)
# ----------------------------------------------------------------------------
def init_params(key, N_joints, in_channel, voxel_feat=5):
    out_channel = voxel_feat * 3
    # (Cin_per_group, Cout_per_group, kernel, stride) -- matches the module
    layer_cfg = [
        (in_channel, 96, 3, 1),
        (96, 64, 3, 2),
        (64, 64, 2, 1),
        (64, out_channel, 3, 1),
    ]
    keys = jax.random.split(key, 2 * len(layer_cfg))
    weights, biases = [], []
    for i, (cin, cout, k, s) in enumerate(layer_cfg):
        bound = 1.0 / np.sqrt(cin * k)
        w = jax.random.uniform(keys[2 * i], (N_joints, cin, cout, k),
                               minval=-bound, maxval=bound, dtype=jnp.float32)
        b = jax.random.uniform(keys[2 * i + 1], (N_joints, cout),
                               minval=-bound, maxval=bound, dtype=jnp.float32)
        weights.append(np.asarray(w))
        biases.append(np.asarray(b))
    return weights, biases, layer_cfg


def _dense_from_convT(w, b, L_in, stride):
    """Grouped ConvTranspose1d (per-group weight w: (G,Cin,Cout,K)) -> dense map
    from flat (Cin*L_in) to flat (Cout*L_out), channel-major flattening."""
    G, Cin, Cout, K = w.shape
    L_out = (L_in - 1) * stride + K
    M = np.zeros((G, Cin * L_in, Cout * L_out), dtype=np.float32)
    for ti in range(L_in):
        for k in range(K):
            to = ti * stride + k
            M[:, ti::L_in, to::L_out] += w[:, :, :, k]
    bf = np.repeat(b, L_out, axis=1)                                # (G, Cout*L_out)
    return M, bf[:, None, :], L_out


def build_dense_params(weights, biases, layer_cfg, voxel_feat, voxel_res,
                       use_bf16=True):
    dense = []
    L = 1
    for (w, b, (cin, cout, k, s)) in zip(weights, biases, layer_cfg):
        M, bf, L = _dense_from_convT(w, b, L, s)
        dense.append([M, bf])

    # Fold the final reshape(...,F,3,R).transpose(-1,-2).flatten() into the last
    # layer's output columns:  final[f*3R + t*3 + d] = flat[(f*3 + d)*R + t]
    out_channel = voxel_feat * 3
    perm = np.zeros(out_channel * voxel_res, dtype=np.int64)
    for f in range(voxel_feat):
        for t in range(voxel_res):
            for d in range(3):
                perm[f * voxel_res * 3 + t * 3 + d] = (f * 3 + d) * voxel_res + t
    dense[-1][0] = dense[-1][0][:, :, perm]
    dense[-1][1] = dense[-1][1][:, :, perm]

    # Pad every layer's output width up to a multiple of 128 so intermediate
    # tiles and the final store are lane-dense; pad the next layer's input rows
    # (with zeros) to match.  Weights -> bf16, biases stay f32.
    w_dtype = jnp.bfloat16 if use_bf16 else jnp.float32
    flat = []
    in_pad = dense[0][0].shape[1]           # Cin stays unpadded (full-dim block)
    for M, bf in dense:
        G, K, N = M.shape
        out_pad = _round_up(N, 128)
        Mp = np.zeros((G, in_pad, out_pad), dtype=np.float32)
        Mp[:, :K, :N] = M
        bp = np.zeros((G, 1, out_pad), dtype=np.float32)
        bp[:, :, :N] = bf
        flat.append(jnp.asarray(Mp, dtype=w_dtype))
        flat.append(jnp.asarray(bp, dtype=jnp.float32))
        in_pad = out_pad
    return tuple(flat)


# ----------------------------------------------------------------------------
# Pure-numpy reference (direct grouped ConvTranspose1d) for verification
# ----------------------------------------------------------------------------
def reference_forward(x, weights, biases, layer_cfg, voxel_feat, voxel_res):
    N_B, N_J, C = x.shape
    h = x[:, :, :, None].astype(np.float32)                         # (B, G, Cin, 1)
    n_layers = len(layer_cfg)
    for i, (w, b, (cin, cout, k, s)) in enumerate(zip(weights, biases, layer_cfg)):
        B, G, Cin, L = h.shape
        Lout = (L - 1) * s + k
        tmp = np.einsum('bgct,gcok->bgotk', h, w)                   # (B,G,Cout,L,K)
        out = np.zeros((B, G, cout, Lout), dtype=np.float32)
        for t in range(L):
            for kk in range(k):
                out[..., t * s + kk] += tmp[..., t, kk]
        out += b[None, :, :, None]
        if i < n_layers - 1:
            out = np.where(out >= 0, out, 0.1 * out)
        h = out
    out = h.reshape(N_B, N_J, voxel_feat, 3, voxel_res)
    out = np.swapaxes(out, -1, -2)
    return out.reshape(N_B, N_J, -1)


if __name__ == "__main__":
    N_B, N_J, in_channel = 16, 4, 6
    voxel_feat, voxel_res = 5, 10
    out_dim = voxel_feat * voxel_res * 3                            # 150

    key = jax.random.PRNGKey(0)
    kx, kp = jax.random.split(key)
    x = jax.random.normal(kx, (N_B, N_J, in_channel), dtype=jnp.float32)

    weights, biases, layer_cfg = init_params(kp, N_J, in_channel, voxel_feat)
    params = build_dense_params(weights, biases, layer_cfg, voxel_feat, voxel_res,
                                use_bf16=True)

    out = parallel_factorize_cnn(x, params, out_dim)
    out = jax.block_until_ready(out)

    assert out.shape == (N_B, N_J, out_dim), out.shape
    ref = reference_forward(np.asarray(x), weights, biases, layer_cfg,
                            voxel_feat, voxel_res)
    # bf16 weights / dot operands (f32 accumulation) -> loosened tolerance.
    np.testing.assert_allclose(np.asarray(out), ref, rtol=2e-2, atol=2e-2)
    print("KERNEL_OK")
</pallas_src>

<mosaic_0001>
module attributes {stable_mosaic.version = 11 : i64} {
  func.func @_pfcnn_kernel(%arg0: i32, %arg1: i32, %arg2: memref<1x16x6xf32, #tpu.memory_space<vmem>>, %arg3: memref<1x6x384xbf16, #tpu.memory_space<vmem>>, %arg4: memref<1x1x384xf32, #tpu.memory_space<vmem>>, %arg5: memref<1x384x512xbf16, #tpu.memory_space<vmem>>, %arg6: memref<1x1x512xf32, #tpu.memory_space<vmem>>, %arg7: memref<1x512x512xbf16, #tpu.memory_space<vmem>>, %arg8: memref<1x1x512xf32, #tpu.memory_space<vmem>>, %arg9: memref<1x512x256xbf16, #tpu.memory_space<vmem>>, %arg10: memref<1x1x256xf32, #tpu.memory_space<vmem>>, %arg11: memref<1x16x256xf32, #tpu.memory_space<vmem>>) attributes {dimension_semantics = [#tpu.dimension_semantics<parallel>, #tpu.dimension_semantics<parallel>], iteration_bounds = array<i64: 4, 1>, scalar_prefetch = 0 : i64, scratch_operands = 0 : i64, tpu.core_type = #tpu.core_type<tc>, window_params = [{transform_indices = @transform_0, window_bounds = array<i64: 1, 16, 6>}, {transform_indices = @transform_1, window_bounds = array<i64: 1, 6, 384>}, {transform_indices = @transform_2, window_bounds = array<i64: 1, 1, 384>}, {transform_indices = @transform_3, window_bounds = array<i64: 1, 384, 512>}, {transform_indices = @transform_4, window_bounds = array<i64: 1, 1, 512>}, {transform_indices = @transform_5, window_bounds = array<i64: 1, 512, 512>}, {transform_indices = @transform_6, window_bounds = array<i64: 1, 1, 512>}, {transform_indices = @transform_7, window_bounds = array<i64: 1, 512, 256>}, {transform_indices = @transform_8, window_bounds = array<i64: 1, 1, 256>}, {transform_indices = @transform_9, window_bounds = array<i64: 1, 16, 256>}]} {
    %c0 = arith.constant 0 : index
    %c0_0 = arith.constant 0 : index
    %c0_1 = arith.constant 0 : index
    %0 = vector.load %arg2[%c0, %c0_0, %c0_1] : memref<1x16x6xf32, #tpu.memory_space<vmem>>, vector<1x16x6xf32>
    %1 = vector.shape_cast %0 : vector<1x16x6xf32> to vector<16x6xf32>
    %2 = arith.truncf %1 : vector<16x6xf32> to vector<16x6xbf16>
    %c0_2 = arith.constant 0 : index
    %c0_3 = arith.constant 0 : index
    %c0_4 = arith.constant 0 : index
    %3 = vector.load %arg3[%c0_2, %c0_3, %c0_4] : memref<1x6x384xbf16, #tpu.memory_space<vmem>>, vector<1x6x384xbf16>
    %4 = vector.shape_cast %3 : vector<1x6x384xbf16> to vector<6x384xbf16>
    %cst = arith.constant dense<0.000000e+00> : vector<16x384xf32>
    %5 = tpu.matmul %2, %4, %cst {dimension_numbers = #tpu.dot_dimension_numbers<[1], [0], [0], [1], [0, 0, 1, 1], [], []>} : vector<16x6xbf16>, vector<6x384xbf16>, vector<16x384xf32> -> vector<16x384xf32>
    %c0_5 = arith.constant 0 : index
    %c0_6 = arith.constant 0 : index
    %c0_7 = arith.constant 0 : index
    %6 = vector.load %arg4[%c0_5, %c0_6, %c0_7] : memref<1x1x384xf32, #tpu.memory_space<vmem>>, vector<1x1x384xf32>
    %7 = vector.shape_cast %6 : vector<1x1x384xf32> to vector<1x384xf32>
    %8 = vector.broadcast %7 : vector<1x384xf32> to vector<16x384xf32>
    %9 = arith.addf %5, %8 : vector<16x384xf32>
    %cst_8 = arith.constant 1.000000e-01 : f32
    %10 = vector.broadcast %cst_8 : f32 to vector<16x384xf32>
    %11 = arith.mulf %10, %9 : vector<16x384xf32>
    %12 = arith.maximumf %9, %11 : vector<16x384xf32>
    %13 = arith.truncf %12 : vector<16x384xf32> to vector<16x384xbf16>
    %c0_9 = arith.constant 0 : index
    %c0_10 = arith.constant 0 : index
    %c0_11 = arith.constant 0 : index
    %14 = vector.load %arg5[%c0_9, %c0_10, %c0_11] : memref<1x384x512xbf16, #tpu.memory_space<vmem>>, vector<1x384x512xbf16>
    %15 = vector.shape_cast %14 : vector<1x384x512xbf16> to vector<384x512xbf16>
    %cst_12 = arith.constant dense<0.000000e+00> : vector<16x512xf32>
    %16 = tpu.matmul %13, %15, %cst_12 {dimension_numbers = #tpu.dot_dimension_numbers<[1], [0], [0], [1], [0, 0, 1, 1], [], []>} : vector<16x384xbf16>, vector<384x512xbf16>, vector<16x512xf32> -> vector<16x512xf32>
    %c0_13 = arith.constant 0 : index
    %c0_14 = arith.constant 0 : index
    %c0_15 = arith.constant 0 : index
    %17 = vector.load %arg6[%c0_13, %c0_14, %c0_15] : memref<1x1x512xf32, #tpu.memory_space<vmem>>, vector<1x1x512xf32>
    %18 = vector.shape_cast %17 : vector<1x1x512xf32> to vector<1x512xf32>
    %19 = vector.broadcast %18 : vector<1x512xf32> to vector<16x512xf32>
    %20 = arith.addf %16, %19 : vector<16x512xf32>
    %cst_16 = arith.constant 1.000000e-01 : f32
    %21 = vector.broadcast %cst_16 : f32 to vector<16x512xf32>
    %22 = arith.mulf %21, %20 : vector<16x512xf32>
    %23 = arith.maximumf %20, %22 : vector<16x512xf32>
    %24 = arith.truncf %23 : vector<16x512xf32> to vector<16x512xbf16>
    %c0_17 = arith.constant 0 : index
    %c0_18 = arith.constant 0 : index
    %c0_19 = arith.constant 0 : index
    %25 = vector.load %arg7[%c0_17, %c0_18, %c0_19] : memref<1x512x512xbf16, #tpu.memory_space<vmem>>, vector<1x512x512xbf16>
    %26 = vector.shape_cast %25 : vector<1x512x512xbf16> to vector<512x512xbf16>
    %cst_20 = arith.constant dense<0.000000e+00> : vector<16x512xf32>
    %27 = tpu.matmul %24, %26, %cst_20 {dimension_numbers = #tpu.dot_dimension_numbers<[1], [0], [0], [1], [0, 0, 1, 1], [], []>} : vector<16x512xbf16>, vector<512x512xbf16>, vector<16x512xf32> -> vector<16x512xf32>
    %c0_21 = arith.constant 0 : index
    %c0_22 = arith.constant 0 : index
    %c0_23 = arith.constant 0 : index
    %28 = vector.load %arg8[%c0_21, %c0_22, %c0_23] : memref<1x1x512xf32, #tpu.memory_space<vmem>>, vector<1x1x512xf32>
    %29 = vector.shape_cast %28 : vector<1x1x512xf32> to vector<1x512xf32>
    %30 = vector.broadcast %29 : vector<1x512xf32> to vector<16x512xf32>
    %31 = arith.addf %27, %30 : vector<16x512xf32>
    %cst_24 = arith.constant 1.000000e-01 : f32
    %32 = vector.broadcast %cst_24 : f32 to vector<16x512xf32>
    %33 = arith.mulf %32, %31 : vector<16x512xf32>
    %34 = arith.maximumf %31, %33 : vector<16x512xf32>
    %35 = arith.truncf %34 : vector<16x512xf32> to vector<16x512xbf16>
    %c0_25 = arith.constant 0 : index
    %c0_26 = arith.constant 0 : index
    %c0_27 = arith.constant 0 : index
    %36 = vector.load %arg9[%c0_25, %c0_26, %c0_27] : memref<1x512x256xbf16, #tpu.memory_space<vmem>>, vector<1x512x256xbf16>
    %37 = vector.shape_cast %36 : vector<1x512x256xbf16> to vector<512x256xbf16>
    %cst_28 = arith.constant dense<0.000000e+00> : vector<16x256xf32>
    %38 = tpu.matmul %35, %37, %cst_28 {dimension_numbers = #tpu.dot_dimension_numbers<[1], [0], [0], [1], [0, 0, 1, 1], [], []>} : vector<16x512xbf16>, vector<512x256xbf16>, vector<16x256xf32> -> vector<16x256xf32>
    %c0_29 = arith.constant 0 : index
    %c0_30 = arith.constant 0 : index
    %c0_31 = arith.constant 0 : index
    %39 = vector.load %arg10[%c0_29, %c0_30, %c0_31] : memref<1x1x256xf32, #tpu.memory_space<vmem>>, vector<1x1x256xf32>
    %40 = vector.shape_cast %39 : vector<1x1x256xf32> to vector<1x256xf32>
    %41 = vector.broadcast %40 : vector<1x256xf32> to vector<16x256xf32>
    %42 = arith.addf %38, %41 : vector<16x256xf32>
    %c0_32 = arith.constant 0 : index
    %c0_33 = arith.constant 0 : index
    %c0_34 = arith.constant 0 : index
    %43 = vector.load %arg11[%c0_32, %c0_33, %c0_34] : memref<1x16x256xf32, #tpu.memory_space<vmem>>, vector<1x16x256xf32>
    %44 = vector.shape_cast %43 : vector<1x16x256xf32> to vector<16x256xf32>
    %45 = vector.shape_cast %42 : vector<16x256xf32> to vector<1x16x256xf32>
    tpu.vector_store %arg11[%c0_32, %c0_33, %c0_34], %45 {strides = array<i32>} : memref<1x16x256xf32, #tpu.memory_space<vmem>>, vector<1x16x256xf32>,
    return
  }
  func.func @transform_0(%arg0: i32, %arg1: i32) -> (i32, i32, i32) {
    %c0_i32 = arith.constant 0 : i32
    %c0_i32_0 = arith.constant 0 : i32
    return %arg0, %arg1, %c0_i32 : i32, i32, i32
  }
  func.func @transform_1(%arg0: i32, %arg1: i32) -> (i32, i32, i32) {
    %c0_i32 = arith.constant 0 : i32
    %c0_i32_0 = arith.constant 0 : i32
    %c0_i32_1 = arith.constant 0 : i32
    return %arg0, %c0_i32, %c0_i32_0 : i32, i32, i32
  }
  func.func @transform_2(%arg0: i32, %arg1: i32) -> (i32, i32, i32) {
    %c0_i32 = arith.constant 0 : i32
    %c0_i32_0 = arith.constant 0 : i32
    %c0_i32_1 = arith.constant 0 : i32
    return %arg0, %c0_i32, %c0_i32_0 : i32, i32, i32
  }
  func.func @transform_3(%arg0: i32, %arg1: i32) -> (i32, i32, i32) {
    %c0_i32 = arith.constant 0 : i32
    %c0_i32_0 = arith.constant 0 : i32
    %c0_i32_1 = arith.constant 0 : i32
    return %arg0, %c0_i32, %c0_i32_0 : i32, i32, i32
  }
  func.func @transform_4(%arg0: i32, %arg1: i32) -> (i32, i32, i32) {
    %c0_i32 = arith.constant 0 : i32
    %c0_i32_0 = arith.constant 0 : i32
    %c0_i32_1 = arith.constant 0 : i32
    return %arg0, %c0_i32, %c0_i32_0 : i32, i32, i32
  }
  func.func @transform_5(%arg0: i32, %arg1: i32) -> (i32, i32, i32) {
    %c0_i32 = arith.constant 0 : i32
    %c0_i32_0 = arith.constant 0 : i32
    %c0_i32_1 = arith.constant 0 : i32
    return %arg0, %c0_i32, %c0_i32_0 : i32, i32, i32
  }
  func.func @transform_6(%arg0: i32, %arg1: i32) -> (i32, i32, i32) {
    %c0_i32 = arith.constant 0 : i32
    %c0_i32_0 = arith.constant 0 : i32
    %c0_i32_1 = arith.constant 0 : i32
    return %arg0, %c0_i32, %c0_i32_0 : i32, i32, i32
  }
  func.func @transform_7(%arg0: i32, %arg1: i32) -> (i32, i32, i32) {
    %c0_i32 = arith.constant 0 : i32
    %c0_i32_0 = arith.constant 0 : i32
    %c0_i32_1 = arith.constant 0 : i32
    return %arg0, %c0_i32, %c0_i32_0 : i32, i32, i32
  }
  func.func @transform_8(%arg0: i32, %arg1: i32) -> (i32, i32, i32) {
    %c0_i32 = arith.constant 0 : i32
    %c0_i32_0 = arith.constant 0 : i32
    %c0_i32_1 = arith.constant 0 : i32
    return %arg0, %c0_i32, %c0_i32_0 : i32, i32, i32
  }
  func.func @transform_9(%arg0: i32, %arg1: i32) -> (i32, i32, i32) {
    %c0_i32 = arith.constant 0 : i32
    %c0_i32_0 = arith.constant 0 : i32
    return %arg0, %arg1, %c0_i32 : i32, i32, i32
  }
}

</mosaic_0001>

<bundles_post_ra>
// kernel: tpu_custom_call.1
= control target key start
LH: loop header
LB: loop body
LE: loop exit
PB: predicated region body
PF: predicated region fallthrough
CT: control target
= control target key end

     0   :  { %s6146_s0 = inlined_call_operand.vmem [shape: f32[4,16,6], index: 0, kind: input, shape index: {}]   ;;  %s6147_s1 = inlined_call_operand.vmem [shape: bf16[4,6,384], index: 1, kind: input, shape index: {}]   ;;  %s6148_s2 = inlined_call_operand.hbm [shape: f32[4,1,384], index: 2, kind: input, shape index: {}]   ;;  %s6149_s3 = inlined_call_operand.hbm [shape: bf16[4,384,512], index: 3, kind: input, shape index: {}]   ;;  %s6150_s4 = inlined_call_operand.hbm [shape: f32[4,1,512], index: 4, kind: input, shape index: {}]   ;;  %s6151_s5 = inlined_call_operand.hbm [shape: bf16[4,512,512], index: 5, kind: input, shape index: {}]   ;;  %s6152_s6 = inlined_call_operand.hbm [shape: f32[4,1,512], index: 6, kind: input, shape index: {}]   ;;  %s6153_s7 = inlined_call_operand.hbm [shape: bf16[4,512,256], index: 7, kind: input, shape index: {}]   ;;  %s6154_s8 = inlined_call_operand.hbm [shape: f32[4,1,256], index: 8, kind: input, shape index: {}]   ;;  %s6155_s9 = inlined_call_operand.hbm [shape: f32[4,16,256], index: 9, kind: output, shape index: {}]  }
   0x1   :  { %6167 = sst [smem:[#allocation27_spill]] %s6146_s0 }
   0x2   :  { %6168 = sst [smem:[#allocation28_spill]] %s6147_s1 }
   0x3   :  { %6169 = sst [smem:[#allocation29_spill]] %s6149_s3 }
   0x4   :  { %6170 = sst [smem:[#allocation30_spill]] %s6151_s5 }
   0x5   :  { %6171 = sst [smem:[#allocation31_spill]] %s6155_s9 }
   0x6   :  { %14 = vsyncpa [#allocation3], 0 }
   0x7   :  { %16 = vsyncpa [#allocation3 + $0x1], 0 }
   0x8   :  { %17 = vsyncpa [#allocation6], 0 }
   0x9   :  { %19 = vsyncpa [#allocation6 + $0x1], 0 }
   0xa   :  { %20 = vsyncpa [#allocation9], 0 }
   0xb   :  { %22 = vsyncpa [#allocation9 + $0x1], 0 }
   0xc   :  { %23 = vsyncpa [#allocation12], 0 }
   0xd   :  { %25 = vsyncpa [#allocation12 + $0x1], 0 }
   0xe   :  { %26 = vsyncpa [#allocation4], 0 }
   0xf   :  { %28 = vsyncpa [#allocation4 + $0x1], 0  ;;  %s5258_s30 = smov 0   ;;  %s5260_s10 = smov 0  }
  0x10   :  { %s5262_s11 = smov 0   ;;  %s5264_s12 = smov 0  }
  0x11   :  { %s5266_s13 = smov 0   ;;  %s5268_s14 = smov 0  }
  0x12 LB: > { %6172 = sst [smem:[#allocation20_spill]] %s5180_s30  ;;  %s5289_s15 = sadd.s32 4294967295, %s5200_s14   ;;  %s5200_s14 = sphi %s5268_s14, %s34_s14   ;;  %s5196_s13 = sphi %s5266_s13, %s6203_s13   ;;  %s5192_s12 = sphi %s5264_s12, %s6202_s12   ;;  %s5188_s11 = sphi %s5262_s11, %s6201_s11   ;;  %s5184_s10 = sphi %s5260_s10, %s6200_s10   ;;  %s5180_s30 = sphi %s5258_s30, %s6199_s30  }
  0x13   : > { %6173 = sst [smem:[#allocation21_spill]] %s5188_s11  ;;  %s3313_s16 = sadd.s32 4294967294, %s5200_s14  }
  0x14   : > { %6174 = sst [smem:[#allocation22_spill]] %s5200_s14  ;;  %s46_s17 = sadd.s32 1, %s5196_s13 }
  0x15   : > { %s107_s18 = sadd.s32 1, %s5188_s11  ;;  %p48_p0 = scmp.ge.s32.totalorder %s46_s17, 4 }
  0x16   : > { %p114_p1 = scmp.ne.s32.totalorder %s5188_s11, %s5184_s10  ;;  %p115_p2 = scmp.eq.s32.totalorder %s5200_s14, 0 }
  0x17   : > { %p120_p3 = scmp.ne.s32.totalorder %s5184_s10, %s5180_s30  ;;  %s6205_s17 = smov (%p48_p0, %s46_s17), 0 }
  0x18   : > { %6175 = sst [smem:[#allocation23_spill]] %s6205_s17  ;;  %p5301_p4 = por %p115_p2, %p114_p1 }
  0x19   : > { %p121_p5 = scmp.eq.s32.totalorder %s5289_s15, 0  ;;  %s104_s20 = ssub.s32 %s5196_s13, %s6205_s17 }
  0x1a   : > { %p302_p6 = scmp.eq.s32.totalorder %s5289_s15, 3  ;;  %p105_p7 = scmp.eq.s32.totalorder %s104_s20, 0 }
  0x1b   : > { %p5309_p8 = por %p121_p5, %p120_p3  ;;  %p308_p10 = scmp.eq.s32.totalorder %s3313_s16, 3 }
  0x1c   : > { %p5313_p9 = por %p302_p6, %p114_p1  ;;  %p4840_p12 = scmp.lt.s32.totalorder %s5200_s14, 4 }
  0x1d   : > { %s5318_s23 = scalar_select %p105_p7, %s5188_s11, %s107_s18  }
  0x1e   : > { %s6178_s22 = scalar_select %p5313_p9, 1, 0 }
  0x1f   : > { %6180 = sst [smem:[#allocation25_spill]] %s5318_s23  ;;  %p5320_p11 = por %p308_p10, %p120_p3 }
  0x20   : > { %6179 = sst [smem:[#allocation24_spill]] %s6178_s22  ;;  %s5326_s25 = sand.u32 1, %s5188_s11  }
  0x21   : > { %s6181_s24 = scalar_select %p5320_p11, 1, 0 }
  0x22   : > { %s5329_s26 = sand.u32 1, %s5200_s14   ;;  %s4793_s27 = smul.u32 768, %s5326_s25 }
  0x23   : > { %6182 = sst [smem:[#allocation26_spill]] %s6181_s24  ;;  %p5334_p13 = pnand %p4840_p12, %p5301_p4 }
  0x24   : > { %s4794_s29 = smul.u32 768, %s5196_s13  ;;  %s372_s16 = scalar_lea.vmem [#allocation5], %s4793_s27 }
  0x25   : > { %s380_s18 = sshll.u32 %s372_s16, 4  ;;  %s6184_s3 = sld [smem:[#allocation29_spill]]  ;;  %s381_s18 = int_to_ptr.vmem [resolvable:$true] %s380_s18 }
  0x26   : > { %s6163_s24 = scalar_lea.sflag [#allocation6], %s5329_s26  ;;  %s5202_s19 = smov 256  }
  0x27   : > { %s5203_s30 = smov 16   ;;  %p3329_p0 = scmp.ge.s32.totalorder %s5200_s14, 1 }
  0x28   : > { %p489_p1 = scmp.lt.s32.totalorder %s5200_s14, 5  ;;  %s3319_s27 = sshll.u32 %s5326_s25, 10 }
  0x29   : > { %s6186_s5 = sld [smem:[#allocation30_spill]]  ;;  %s5204_s14 = smov 128  }
  0x2a   : > { %p5350_p2 = pnand %p3329_p0, %p489_p1  ;;  %s5205_s1 = smov 8  }
  0x2b   : > { %s377_s23 = scalar_lea.hbm %s6184_s3, %s4794_s29  ;;  %s413_s29 = scalar_lea.vmem [#allocation8], %s3319_s27 }
  0x2c   : > { %s378_s11 = sshll.u32 %s377_s23, 4  ;;  %s4499_s23 = sshll.u32 %s5196_s13, 10  ;;  %s379_s11 = int_to_ptr.hbm [resolvable:$true] %s378_s11 }
  0x2d   : > { %4820 = dma.hbm_to_vmem [thread:$0]  (!%p5334_p13), %s379_s11, 12288, %s381_s18, %s6163_s24, %s5202_s19, %s5202_s19, %s5203_s30  }
  0x2e   : > { %s421_s16 = sshll.u32 %s413_s29, 4  ;;  %s3324_s11 = sshll.u32 %s5326_s25, 9  ;;  %s422_s16 = int_to_ptr.vmem [resolvable:$true] %s421_s16 }
  0x2f   : > { %s418_s22 = scalar_lea.hbm %s6186_s5, %s4499_s23  ;;  %s6166_s18 = scalar_lea.sflag [#allocation9], %s5329_s26 }
  0x30   : > { %s419_s9 = sshll.u32 %s418_s22, 4  ;;  %s4500_s27 = sshll.u32 %s5196_s13, 9  ;;  %s420_s9 = int_to_ptr.hbm [resolvable:$true] %s419_s9 }
  0x31   : > { %4826 = dma.hbm_to_vmem [thread:$0]  (!%p5334_p13), %s420_s9, 16384, %s422_s16, %s6166_s18, %s5202_s19, %s5202_s19, %s5203_s30  }
  0x32   : > { %s459_s3 = scalar_lea.hbm %s6153_s7, %s4500_s27  ;;  %s454_s23 = scalar_lea.vmem [#allocation11], %s3324_s11 }
  0x33   : > { %s462_s20 = sshll.u32 %s454_s23, 4  ;;  %s460_s5 = sshll.u32 %s459_s3, 4  ;;  %s463_s20 = int_to_ptr.vmem [resolvable:$true] %s462_s20  ;;  %s461_s5 = int_to_ptr.hbm [resolvable:$true] %s460_s5 }
  0x34   : > { %s451_s22 = scalar_lea.sflag [#allocation12], %s5329_s26  ;;  %s4791_s0 = smul.u32 3, %s5326_s25 }
  0x35   : > { %4832 = dma.hbm_to_vmem [thread:$0]  (!%p5334_p13), %s461_s5, 8192, %s463_s20, %s451_s22, %s5204_s14, %s5204_s14, %s5205_s1  }
  0x36   : > { %s3317_s9 = sshll.u32 %s5326_s25, 2  ;;  %s4792_s30 = smul.u32 3, %s5196_s13 }
  0x37   : > { %s3318_s24 = sshll.u32 %s5196_s13, 2  ;;  %s353_s27 = scalar_lea.vmem [#allocation2], %s4791_s0 }
  0x38   : > { %s357_s11 = scalar_lea.hbm %s6148_s2, %s4792_s30  ;;  %s361_s29 = sshll.u32 %s353_s27, 4  ;;  %s362_s29 = int_to_ptr.vmem [resolvable:$true] %s361_s29 }
  0x39   : > { %s359_s3 = sshll.u32 %s357_s11, 4  ;;  %s398_s1 = scalar_lea.hbm %s6150_s4, %s3318_s24  ;;  %s360_s3 = int_to_ptr.hbm [resolvable:$true] %s359_s3 }
  0x3a   : > { %s350_s5 = scalar_lea.sflag [#allocation3], %s5326_s25  ;;  %s400_s14 = sshll.u32 %s398_s1, 4  ;;  %s401_s14 = int_to_ptr.hbm [resolvable:$true] %s400_s14 }
  0x3b   : > { %4817 = dma.hbm_to_vmem [thread:$0]  (!%p5334_p13), %s360_s3, 48, %s362_s29, %s350_s5  }
  0x3c   : > { %s394_s20 = scalar_lea.vmem [#allocation7], %s3317_s9  ;;  %s6187_s0 = scalar_lea.sflag [#allocation6], %s5329_s26 }
  0x3d   : > { %s402_s19 = sshll.u32 %s394_s20, 4  ;;  %s439_s18 = scalar_lea.hbm %s6152_s6, %s3318_s24  ;;  %s403_s19 = int_to_ptr.vmem [resolvable:$true] %s402_s19 }
  0x3e   : > { %4823 = dma.hbm_to_vmem [thread:$0]  (!%p5334_p13), %s401_s14, 64, %s403_s19, %s6187_s0  }
  0x3f   : > { %s441_s11 = sshll.u32 %s439_s18, 4  ;;  %s435_s27 = scalar_lea.vmem [#allocation10], %s3317_s9  ;;  %s442_s11 = int_to_ptr.hbm [resolvable:$true] %s441_s11 }
  0x40   : > { %s443_s23 = sshll.u32 %s435_s27, 4  ;;  %s6188_s29 = scalar_lea.sflag [#allocation9], %s5329_s26  ;;  %s444_s23 = int_to_ptr.vmem [resolvable:$true] %s443_s23 }
  0x41   : > { %4829 = dma.hbm_to_vmem [thread:$0]  (!%p5334_p13), %s442_s11, 64, %s444_s23, %s6188_s29  }
  0x42   : > { %s3327_s3 = sshll.u32 %s5326_s25, 1  ;;  %s3328_s1 = sshll.u32 %s5196_s13, 1 }
  0x43   : > { %s480_s14 = scalar_lea.hbm %s6154_s8, %s3328_s1  ;;  %s476_s0 = scalar_lea.vmem [#allocation13], %s3327_s3 }
  0x44   : > { %s482_s19 = sshll.u32 %s480_s14, 4  ;;  %s484_s30 = sshll.u32 %s476_s0, 4  ;;  %s483_s19 = int_to_ptr.hbm [resolvable:$true] %s482_s19  ;;  %s485_s30 = int_to_ptr.vmem [resolvable:$true] %s484_s30 }
  0x45   : > { %4835 = dma.hbm_to_vmem [thread:$0]  (!%p5334_p13), %s483_s19, 32, %s485_s30, %s451_s22  }
  0x46   : > { %493 = sbr.rel (%p5350_p2) target bundleno = 803 (0x323), region = 56  ;;  %s5409_s9 = sand.u32 (!%p5350_p2), 1, %s5184_s10  }
  0x47   : > { %s4795_s25 = smul.u32 (!%p5350_p2), 3, %s5409_s9  ;;  %s496_s24 = scalar_lea.sflag (!%p5350_p2), [#allocation3], %s5409_s9 }
  0x49   : > { %s5413_s16 = scalar_lea.vmem (!%p5350_p2), [#allocation2], %s4795_s25 }
  0x4b   : > { %5159 = dma.done.wait (%p5309_p8), %s496_s24, 48  }
  0x4c   : > { %5161 = vsyncadd (%p5309_p8), %s496_s24, 4294967248  ;;  %s505_s26 = sand.u32 1, %s5289_s15   ;;  %s4796_s28 = smul.u32 768, %s5409_s9 }
  0x4d   : > { %s506_s17 = scalar_lea.sflag [#allocation6], %s505_s26 }
  0x4e   : > { %s5421_s22 = scalar_lea.vmem [#allocation5], %s4796_s28 }
  0x4f   : > { %5163 = dma.done.wait (%p5309_p8), %s506_s17, 12352  }
  0x50   : > { %5165 = vsyncadd (%p5309_p8), %s506_s17, 4294954944  ;;  %s3330_s18 = sshll.u32 %s5409_s9, 2  ;;  %s3331_s11 = sshll.u32 %s5409_s9, 10 }
  0x51   : > { %s5429_s27 = scalar_lea.vmem [#allocation7], %s3330_s18  ;;  %s526_s23 = scalar_lea.sflag [#allocation9], %s505_s26 }
  0x52   : > { %s5431_s29 = scalar_lea.vmem [#allocation8], %s3331_s11 }
  0x53   : > { %5167 = dma.done.wait (%p5309_p8), %s526_s23, 16448  }
  0x54   : > { %5169 = vsyncadd (%p5309_p8), %s526_s23, 4294950848  ;;  %s3333_s15 = sshll.u32 %s5409_s9, 9  ;;  %s5438_s3 = scalar_lea.vmem [#allocation10], %s3330_s18 }
  0x55   : > { %s546_s1 = scalar_lea.sflag [#allocation12], %s505_s26  ;;  %s5440_s5 = scalar_lea.vmem [#allocation11], %s3333_s15 }
  0x56   : > { %5171 = dma.done.wait (%p5309_p8), %s546_s1, 8224  }
  0x57   : > { %5173 = vsyncadd (%p5309_p8), %s546_s1, 4294959072  ;;  %p640_p3 = scmp.lt.s32.totalorder %s5192_s12, 3  ;;  %s6189_s25 = sld [smem:[#allocation27_spill]]  ;;  %vm681_vm0 = vcmask 1042432   ;;  %vm677_vm1 = vcmask 48128  }
  0x58   : > { %s6190_s17 = sld [smem:[#allocation28_spill]]  ;;  %v3456_v7 = vld [vmem:[%s5421_s22 + $0xe0] sm:$0xf]  ;;  %v4532_v8 = vld [vmem:[%s5421_s22 + $0xec] sm:$0xf0]  ;;  %s3335_s18 = sshll.u32 %s5409_s9, 5 }
  0x59   : > { %s641_s20 = scalar_select %p640_p3, %s5192_s12, 3  ;;  %v3457_v9 = vor.u32 %v4532_v8, %v3456_v7  ;;  %v3584_v10 = vld [vmem:[%s5421_s22 + $0x1e0] sm:$0xf]  ;;  %v4564_v11 = vld [vmem:[%s5421_s22 + $0x1ec] sm:$0xf0] }
  0x5a   : > { %v4530_v12 = vld [vmem:[%s5421_s22 + $0xe4] sm:$0xf]  ;;  %v3585_v16 = vor.u32 %v4564_v11, %v3584_v10  ;;  %v3458_v17 = vld [vmem:[%s5421_s22 + $0xf0] sm:$0xf0]  ;;  %v3440_v18 = vld [vmem:[%s5421_s22 + $0xc0] sm:$0xf] }
  0x5b   : > { %s4797_s14 = smul.u32 12, %s641_s20  ;;  %s4501_s19 = sshll.u32 %s641_s20, 4  ;;  %v4528_v19 = vld [vmem:[%s5421_s22 + $0xcc] sm:$0xf0]  ;;  %1334 = vmatpush.bf16.msra.mxu3 %v3457_v9  ;;  %v3461_v20 = vor.u32 %v4530_v12, %v3458_v17  ;;  %v3568_v22 = vld [vmem:[%s5421_s22 + $0x1c0] sm:$0xf] }
  0x5c   : > { %v3441_v21 = vor.u32 %v4528_v19, %v3440_v18  ;;  %v4560_v23 = vld [vmem:[%s5421_s22 + $0x1cc] sm:$0xf0]  ;;  %v4526_v24 = vld [vmem:[%s5421_s22 + $0xc4] sm:$0xf]  ;;  %v3442_v29 = vld [vmem:[%s5421_s22 + $0xd0] sm:$0xf0] }
  0x5d   : > { %s647_s24 = scalar_lea.vmem %s6189_s25, %s4501_s19  ;;  %v3712_v30 = vld [vmem:[%s5421_s22 + $0x2e0] sm:$0xf]  ;;  %v4596_v31 = vld [vmem:[%s5421_s22 + $0x2ec] sm:$0xf0]  ;;  %v3569_v33 = vor.u32 %v4560_v23, %v3568_v22  ;;  %v3445_v38 = vor.u32 %v4526_v24, %v3442_v29  ;;  %v4522_v40 = vld [vmem:[%s5421_s22 + $0xa4] sm:$0xf] }
  0x5e   : > { %s653_s21 = scalar_lea.vmem %s6190_s17, %s4797_s14  ;;  %v656_v2 = vld [vmem:[%s647_s24] sm:$0xff]  ;;  %v657_v6 = vld [vmem:[%s647_s24 + $0x8] sm:$0xff]  ;;  %v3713_v34 = vor.u32 %v4596_v31, %v3712_v30  ;;  %v4524_v35 = vld [vmem:[%s5421_s22 + $0xac] sm:$0xf0]  ;;  %s6102_s11 = scalar_lea.vmem [#allocation14], %s3335_s18 }
  0x5f   : > { %v659_v0 = vld [vmem:[%s653_s21] sm:$0x77]  ;;  %v660_v1 = vld [vmem:[%s653_s21 + $0x8] sm:$0x7]  ;;  %v658_v28 = vpack.c.bf16 %v657_v6, %v656_v2  ;;  %v4556_v37 = vld [vmem:[%s5421_s22 + $0x1ac] sm:$0xf0]  ;;  %1335 = vmatpush.bf16.msra.mxu3 %v3441_v21 }
  0x60   : > { %v671_v3 = vunpack.c.l.b16 %v659_v0  ;;  %v672_v4 = vunpack.c.h.b16 %v659_v0  ;;  %v673_v5 = vunpack.c.l.b16 %v660_v1  ;;  %v3424_v32 = vld [vmem:[%s5421_s22 + $0xa0] sm:$0xf]  ;;  %v3426_v41 = vld [vmem:[%s5421_s22 + $0xb0] sm:$0xf0]  ;;  %v4592_v43 = vld [vmem:[%s5421_s22 + $0x2cc] sm:$0xf0] }
  0x61   : > { %v3552_v36 = vld [vmem:[%s5421_s22 + $0x1a0] sm:$0xf]  ;;  %v3425_v39 = vor.u32 %v4524_v35, %v3424_v32  ;;  %v4520_v45 = vld [vmem:[%s5421_s22 + $0x8c] sm:$0xf0]  ;;  %v3429_v50 = vor.u32 %v4522_v40, %v3426_v41  ;;  %v4518_v54 = vld [vmem:[%s5421_s22 + $0x84] sm:$0xf] }
  0x62   : > { %v674_v13 = vpack.c.b16 %v671_v3, %v671_v3  ;;  %v675_v14 = vpack.c.b16 %v672_v4, %v672_v4  ;;  %v676_v15 = vpack.c.b16 %v673_v5, %v673_v5  ;;  %v3696_v42 = vld [vmem:[%s5421_s22 + $0x2c0] sm:$0xf]  ;;  %v3553_v47 = vor.u32 %v4556_v37, %v3552_v36  ;;  %v4588_v49 = vld [vmem:[%s5421_s22 + $0x2ac] sm:$0xf0]  ;;  %v3410_v55 = vld [vmem:[%s5421_s22 + $0x90] sm:$0xf0] }
  0x63   : > { %v3408_v44 = vld [vmem:[%s5421_s22 + $0x80] sm:$0xf]  ;;  %v3697_v46 = vor.u32 %v4592_v43, %v3696_v42  ;;  %1336 = vmatpush.bf16.msra.mxu3 %v3425_v39  ;;  %v4552_v53 = vld [vmem:[%s5421_s22 + $0x18c] sm:$0xf0]  ;;  %v3413_v62 = vor.u32 %v4518_v54, %v3410_v55  ;;  %v4514_v2 = vld [vmem:[%s5421_s22 + $0x64] sm:$0xf] }
  0x64   : > { %v683_v25 = vsel %vm681_vm0, %v674_v13, 0  ;;  %v686_v26 = vsel %vm681_vm0, %v675_v14, 0  ;;  %v689_v27 = vsel %vm681_vm0, %v676_v15, 0  ;;  %v3680_v48 = vld [vmem:[%s5421_s22 + $0x2a0] sm:$0xf]  ;;  %v3409_v51 = vor.u32 %v4520_v45, %v3408_v44  ;;  %s6191_s15 = sld [smem:[#allocation31_spill]] }
  0x65   : > { %698 = vmatpush.bf16.msra.mxu0 %v683_v25  ;;  %712 = vmatpush.bf16.msra.mxu1 %v686_v26  ;;  %v3536_v52 = vld [vmem:[%s5421_s22 + $0x180] sm:$0xf]  ;;  %v4516_v57 = vld [vmem:[%s5421_s22 + $0x6c] sm:$0xf0]  ;;  %v3681_v58 = vor.u32 %v4588_v49, %v3680_v48  ;;  %v3394_v3 = vld [vmem:[%s5421_s22 + $0x70] sm:$0xf0] }
  0x66   : > { %726 = vmatpush.bf16.msra.mxu2 %v689_v27  ;;  %v3392_v56 = vld [vmem:[%s5421_s22 + $0x60] sm:$0xf]  ;;  %v3537_v59 = vor.u32 %v4552_v53, %v3536_v52  ;;  %v4584_v61 = vld [vmem:[%s5421_s22 + $0x28c] sm:$0xf0]  ;;  %v3397_v10 = vor.u32 %v4514_v2, %v3394_v3  ;;  %v4510_v14 = vld [vmem:[%s5421_s22 + $0x44] sm:$0xf] }
  0x67   : > { %v3664_v60 = vld [vmem:[%s5421_s22 + $0x280] sm:$0xf]  ;;  %1337 = vmatpush.bf16.msra.mxu3 %v3409_v51  ;;  %v3393_v63 = vor.u32 %v4516_v57, %v3392_v56  ;;  %v4548_v1 = vld [vmem:[%s5421_s22 + $0x16c] sm:$0xf0]  ;;  %v3378_v15 = vld [vmem:[%s5421_s22 + $0x50] sm:$0xf0] }
  0x68   : > { %3339 = vmatmul.msk.bf16.vlgmr.msra.gmra.mxu0 %vm677_vm1, %v658_v28  ;;  %3340 = vmatmul.msk.bf16.vlgmr.msra.gmra.mxu1 %vm677_vm1, %v658_v28  ;;  %v3520_v0 = vld [vmem:[%s5421_s22 + $0x160] sm:$0xf]  ;;  %v4512_v5 = vld [vmem:[%s5421_s22 + $0x4c] sm:$0xf0]  ;;  %v3665_v6 = vor.u32 %v4584_v61, %v3664_v60  ;;  %v3381_v22 = vor.u32 %v4510_v14, %v3378_v15  ;;  %v4506_v26 = vld [vmem:[%s5421_s22 + $0x24] sm:$0xf] }
  0x69   : > { %1348 = vmatpush.bf16.msrb.mxu0 %v3585_v16  ;;  %3341 = vmatmul.msk.bf16.vlgmr.msra.gmra.mxu2 %vm677_vm1, %v658_v28  ;;  %v3376_v4 = vld [vmem:[%s5421_s22 + $0x40] sm:$0xf]  ;;  %v3521_v7 = vor.u32 %v4548_v1, %v3520_v0  ;;  %v4580_v9 = vld [vmem:[%s5421_s22 + $0x26c] sm:$0xf0]  ;;  %v3362_v27 = vld [vmem:[%s5421_s22 + $0x30] sm:$0xf0] }
  0x6a   : > { %1376 = vmatpush.bf16.msrb.mxu2 %v3461_v20  ;;  %1362 = vmatpush.bf16.msrb.mxu1 %v3713_v34  ;;  %v3648_v8 = vld [vmem:[%s5421_s22 + $0x260] sm:$0xf]  ;;  %v3377_v11 = vor.u32 %v4512_v5, %v3376_v4  ;;  %v4544_v13 = vld [vmem:[%s5421_s22 + $0x14c] sm:$0xf0]  ;;  %v4562_v31 = vld [vmem:[%s5421_s22 + $0x1e4] sm:$0xf]  ;;  %v3365_v37 = vor.u32 %v4506_v26, %v3362_v27 }
  0x6b   : > { %1338 = vmatpush.bf16.msra.mxu3 %v3393_v63  ;;  %v3504_v12 = vld [vmem:[%s5421_s22 + $0x140] sm:$0xf]  ;;  %v4508_v17 = vld [vmem:[%s5421_s22 + $0x2c] sm:$0xf0]  ;;  %v3649_v18 = vor.u32 %v4580_v9, %v3648_v8  ;;  %v3586_v32 = vld [vmem:[%s5421_s22 + $0x1f0] sm:$0xf0] }
  0x6c   : > { %v3360_v16 = vld [vmem:[%s5421_s22 + $0x20] sm:$0xf]  ;;  %v3505_v19 = vor.u32 %v4544_v13, %v3504_v12  ;;  %v4576_v21 = vld [vmem:[%s5421_s22 + $0x24c] sm:$0xf0]  ;;  %v4502_v40 = vld [vmem:[%s5421_s22 + $0x4] sm:$0xf]  ;;  %v3589_v42 = vor.u32 %v4562_v31, %v3586_v32 }
  0x6d   : > { %1349 = vmatpush.bf16.msrb.mxu0 %v3569_v33  ;;  %v3632_v20 = vld [vmem:[%s5421_s22 + $0x240] sm:$0xf]  ;;  %v3361_v23 = vor.u32 %v4508_v17, %v3360_v16  ;;  %v4540_v25 = vld [vmem:[%s5421_s22 + $0x12c] sm:$0xf0]  ;;  %v3346_v41 = vld [vmem:[%s5421_s22 + $0x10] sm:$0xf0] }
  0x6e   : > { %1377 = vmatpush.bf16.msrb.mxu2 %v3445_v38  ;;  %1363 = vmatpush.bf16.msrb.mxu1 %v3697_v46  ;;  %v3488_v24 = vld [vmem:[%s5421_s22 + $0x120] sm:$0xf]  ;;  %v4504_v29 = vld [vmem:[%s5421_s22 + $0xc] sm:$0xf0]  ;;  %v3633_v30 = vor.u32 %v4576_v21, %v3632_v20  ;;  %v4594_v43 = vld [vmem:[%s5421_s22 + $0x2e4] sm:$0xf]  ;;  %v3349_v53 = vor.u32 %v4502_v40, %v3346_v41 }
  0x6f   : > { %1339 = vmatpush.bf16.msra.mxu3 %v3377_v11  ;;  %v3344_v28 = vld [vmem:[%s5421_s22] sm:$0xf]  ;;  %v3489_v33 = vor.u32 %v4540_v25, %v3488_v24  ;;  %v4572_v36 = vld [vmem:[%s5421_s22 + $0x22c] sm:$0xf0]  ;;  %v3714_v44 = vld [vmem:[%s5421_s22 + $0x2f0] sm:$0xf0] }
  0x70   : > { %v3472_v34 = vld [vmem:[%s5421_s22 + $0x100] sm:$0xf]  ;;  %v3345_v38 = vor.u32 %v4504_v29, %v3344_v28  ;;  %v4536_v39 = vld [vmem:[%s5421_s22 + $0x10c] sm:$0xf0]  ;;  %v3592_v45 = vld [vmem:[%s5421_s22 + $0x1e8] sm:$0xf]  ;;  %v3717_v54 = vor.u32 %v4594_v43, %v3714_v44 }
  0x71   : > { %1350 = vmatpush.bf16.msrb.mxu0 %v3553_v47  ;;  %v3616_v35 = vld [vmem:[%s5421_s22 + $0x220] sm:$0xf]  ;;  %v4565_v46 = vld [vmem:[%s5421_s22 + $0x1f4] sm:$0xf0]  ;;  %v4558_v48 = vld [vmem:[%s5421_s22 + $0x1c4] sm:$0xf] }
  0x72   : > { %1378 = vmatpush.bf16.msrb.mxu2 %v3429_v50  ;;  %1364 = vmatpush.bf16.msrb.mxu1 %v3681_v58  ;;  %v3617_v47 = vor.u32 %v4572_v36, %v3616_v35  ;;  %v3570_v49 = vld [vmem:[%s5421_s22 + $0x1d0] sm:$0xf0]  ;;  %v3473_v50 = vor.u32 %v4536_v39, %v3472_v34  ;;  %v3600_v51 = vld [vmem:[%s5421_s22 + $0x200] sm:$0xf]  ;;  %v4568_v52 = vld [vmem:[%s5421_s22 + $0x20c] sm:$0xf0]  ;;  %v3593_v57 = vor.u32 %v4565_v46, %v3592_v45 }
  0x73   : > { %1340 = vmatpush.bf16.msra.mxu3 %v3361_v23  ;;  %v3464_v55 = vld [vmem:[%s5421_s22 + $0xe8] sm:$0xf]  ;;  %v4533_v56 = vld [vmem:[%s5421_s22 + $0xf4] sm:$0xf0]  ;;  %v3573_v58 = vor.u32 %v4558_v48, %v3570_v49  ;;  %v3698_v60 = vld [vmem:[%s5421_s22 + $0x2d0] sm:$0xf0]  ;;  %v3601_v63 = vor.u32 %v4568_v52, %v3600_v51 }
  0x74   : > { %v3576_v61 = vld [vmem:[%s5421_s22 + $0x1c8] sm:$0xf]  ;;  %v4554_v0 = vld [vmem:[%s5421_s22 + $0x1a4] sm:$0xf]  ;;  %v3554_v1 = vld [vmem:[%s5421_s22 + $0x1b0] sm:$0xf0]  ;;  %v3465_v2 = vor.u32 %v4533_v56, %v3464_v55 }
  0x75   : > { %1351 = vmatpush.bf16.msrb.mxu0 %v3537_v59  ;;  %v4590_v59 = vld [vmem:[%s5421_s22 + $0x2c4] sm:$0xf]  ;;  %v3448_v4 = vld [vmem:[%s5421_s22 + $0xc8] sm:$0xf]  ;;  %v4529_v5 = vld [vmem:[%s5421_s22 + $0xd4] sm:$0xf0] }
  0x76   : > { %1379 = vmatpush.bf16.msrb.mxu2 %v3413_v62  ;;  %1365 = vmatpush.bf16.msrb.mxu1 %v3665_v6  ;;  %v4561_v62 = vld [vmem:[%s5421_s22 + $0x1d4] sm:$0xf0]  ;;  %v3701_v3 = vor.u32 %v4590_v59, %v3698_v60  ;;  %v4586_v8 = vld [vmem:[%s5421_s22 + $0x2a4] sm:$0xf]  ;;  %v3682_v9 = vld [vmem:[%s5421_s22 + $0x2b0] sm:$0xf0]  ;;  %v3449_v12 = vor.u32 %v4529_v5, %v3448_v4 }
  0x77   : > { %1341 = vmatpush.bf16.msra.mxu3 %v3345_v38  ;;  %v3577_v6 = vor.u32 %v4561_v62, %v3576_v61  ;;  %v4557_v11 = vld [vmem:[%s5421_s22 + $0x1b4] sm:$0xf0]  ;;  %v3685_v13 = vor.u32 %v4586_v8, %v3682_v9  ;;  %v4550_v15 = vld [vmem:[%s5421_s22 + $0x184] sm:$0xf]  ;;  %v3538_v16 = vld [vmem:[%s5421_s22 + $0x190] sm:$0xf0] }
  0x78   : > { %v4582_v17 = vld [vmem:[%s5421_s22 + $0x284] sm:$0xf]  ;;  %v3544_v20 = vld [vmem:[%s5421_s22 + $0x188] sm:$0xf]  ;;  %v4553_v21 = vld [vmem:[%s5421_s22 + $0x194] sm:$0xf0] }
  0x79   : > { %1352 = vmatpush.bf16.msrb.mxu0 %v3521_v7  ;;  %v3557_v7 = vor.u32 %v4554_v0, %v3554_v1  ;;  %v3545_v23 = vor.u32 %v4553_v21, %v3544_v20  ;;  %v3432_v24 = vld [vmem:[%s5421_s22 + $0xa8] sm:$0xf]  ;;  %v4525_v25 = vld [vmem:[%s5421_s22 + $0xb4] sm:$0xf0]  ;;  %v4546_v27 = vld [vmem:[%s5421_s22 + $0x164] sm:$0xf] }
  0x7a   : > { %1380 = vmatpush.bf16.msrb.mxu2 %v3397_v10  ;;  %1366 = vmatpush.bf16.msrb.mxu1 %v3649_v18  ;;  %v3560_v10 = vld [vmem:[%s5421_s22 + $0x1a8] sm:$0xf]  ;;  %v3541_v18 = vor.u32 %v4550_v15, %v3538_v16  ;;  %v3433_v26 = vor.u32 %v4525_v25, %v3432_v24  ;;  %v3522_v28 = vld [vmem:[%s5421_s22 + $0x170] sm:$0xf0]  ;;  %v4578_v29 = vld [vmem:[%s5421_s22 + $0x264] sm:$0xf] }
  0x7b   : > { %1390 = vmatpush.bf16.msrb.mxu3 %v3589_v42  ;;  %v3561_v14 = vor.u32 %v4557_v11, %v3560_v10  ;;  %v3650_v31 = vld [vmem:[%s5421_s22 + $0x270] sm:$0xf0]  ;;  %v3528_v32 = vld [vmem:[%s5421_s22 + $0x168] sm:$0xf]  ;;  %v4542_v39 = vld [vmem:[%s5421_s22 + $0x144] sm:$0xf] }
  0x7c   : > { %v3653_v34 = vor.u32 %v4578_v29, %v3650_v31  ;;  %v3416_v36 = vld [vmem:[%s5421_s22 + $0x88] sm:$0xf]  ;;  %v3506_v40 = vld [vmem:[%s5421_s22 + $0x150] sm:$0xf0]  ;;  %v4574_v41 = vld [vmem:[%s5421_s22 + $0x244] sm:$0xf] }
  0x7d   : > { %1353 = vmatpush.bf16.msrb.mxu0 %v3505_v19  ;;  %v3666_v19 = vld [vmem:[%s5421_s22 + $0x290] sm:$0xf0]  ;;  %v3509_v42 = vor.u32 %v4542_v39, %v3506_v40  ;;  %v3512_v44 = vld [vmem:[%s5421_s22 + $0x148] sm:$0xf]  ;;  %v4545_v45 = vld [vmem:[%s5421_s22 + $0x154] sm:$0xf0] }
  0x7e   : > { %1381 = vmatpush.bf16.msrb.mxu2 %v3381_v22  ;;  %1367 = vmatpush.bf16.msrb.mxu1 %v3633_v30  ;;  %v3669_v22 = vor.u32 %v4582_v17, %v3666_v19  ;;  %v3525_v30 = vor.u32 %v4546_v27, %v3522_v28  ;;  %v3634_v43 = vld [vmem:[%s5421_s22 + $0x250] sm:$0xf0]  ;;  %v3400_v48 = vld [vmem:[%s5421_s22 + $0x68] sm:$0xf]  ;;  %v4517_v49 = vld [vmem:[%s5421_s22 + $0x74] sm:$0xf0] }
  0x7f   : > { %1391 = vmatpush.bf16.msrb.mxu3 %v3573_v58  ;;  %v3637_v46 = vor.u32 %v4574_v41, %v3634_v43  ;;  %v4538_v51 = vld [vmem:[%s5421_s22 + $0x124] sm:$0xf]  ;;  %v3490_v52 = vld [vmem:[%s5421_s22 + $0x130] sm:$0xf0]  ;;  %v3496_v56 = vld [vmem:[%s5421_s22 + $0x128] sm:$0xf] }
  0x80   : > { %v3618_v55 = vld [vmem:[%s5421_s22 + $0x230] sm:$0xf0]  ;;  %v3384_v60 = vld [vmem:[%s5421_s22 + $0x48] sm:$0xf]  ;;  %v4513_v61 = vld [vmem:[%s5421_s22 + $0x54] sm:$0xf0] }
  0x81   : > { %1354 = vmatpush.bf16.msrb.mxu0 %v3489_v33  ;;  %v4549_v33 = vld [vmem:[%s5421_s22 + $0x174] sm:$0xf0]  ;;  %v3385_v62 = vor.u32 %v4513_v61, %v3384_v60  ;;  %v3474_v0 = vld [vmem:[%s5421_s22 + $0x110] sm:$0xf0]  ;;  %v4566_v1 = vld [vmem:[%s5421_s22 + $0x204] sm:$0xf] }
  0x82   : > { %1382 = vmatpush.bf16.msrb.mxu2 %v3365_v37  ;;  %1368 = vmatpush.bf16.msrb.mxu1 %v3617_v47  ;;  %v3529_v35 = vor.u32 %v4549_v33, %v3528_v32  ;;  %v4521_v37 = vld [vmem:[%s5421_s22 + $0x94] sm:$0xf0]  ;;  %v3513_v47 = vor.u32 %v4545_v45, %v3512_v44  ;;  %v3480_v4 = vld [vmem:[%s5421_s22 + $0x108] sm:$0xf]  ;;  %v4531_v33 = vld [vmem:[%s5421_s22 + $0xec] sm:$0xf] }
  0x83   : > { %1392 = vmatpush.bf16.msrb.mxu3 %v3557_v7  ;;  %v3417_v38 = vor.u32 %v4521_v37, %v3416_v36  ;;  %v4537_v5 = vld [vmem:[%s5421_s22 + $0x114] sm:$0xf0]  ;;  %v3368_v8 = vld [vmem:[%s5421_s22 + $0x28] sm:$0xf]  ;;  %v4595_v36 = vld [vmem:[%s5421_s22 + $0x2ec] sm:$0xf] }
  0x84   : > { %v3481_v7 = vor.u32 %v4537_v5, %v3480_v4  ;;  %v4509_v9 = vld [vmem:[%s5421_s22 + $0x34] sm:$0xf0]  ;;  %v3352_v11 = vld [vmem:[%s5421_s22 + $0x8] sm:$0xf]  ;;  %v3722_v37 = vld [vmem:[%s5421_s22 + $0x2f8] sm:$0xf0] }
  0x85   : > { %1355 = vmatpush.bf16.msrb.mxu0 %v3473_v50  ;;  %v3401_v50 = vor.u32 %v4517_v49, %v3400_v48  ;;  %v3369_v10 = vor.u32 %v4509_v9, %v3368_v8  ;;  %v3720_v29 = vld [vmem:[%s5421_s22 + $0x2e8] sm:$0xf]  ;;  %v3725_v48 = vor.u32 %v4595_v36, %v3722_v37  ;;  %v4593_v49 = vld [vmem:[%s5421_s22 + $0x2d4] sm:$0xf0]  ;;  %v4587_v4 = vld [vmem:[%s5421_s22 + $0x2ac] sm:$0xf] }
  0x86   : > { %1383 = vmatpush.bf16.msrb.mxu2 %v3349_v53  ;;  %1369 = vmatpush.bf16.msrb.mxu1 %v3601_v63  ;;  %v4570_v53 = vld [vmem:[%s5421_s22 + $0x224] sm:$0xf]  ;;  %v3704_v43 = vld [vmem:[%s5421_s22 + $0x2c8] sm:$0xf]  ;;  %v3690_v5 = vld [vmem:[%s5421_s22 + $0x2b8] sm:$0xf0] }
  0x87   : > { %1393 = vmatpush.bf16.msrb.mxu3 %v3541_v18  ;;  %v3621_v58 = vor.u32 %v4570_v53, %v3618_v55  ;;  %v4534_v63 = vld [vmem:[%s5421_s22 + $0x104] sm:$0xf]  ;;  %v3706_v55 = vld [vmem:[%s5421_s22 + $0x2d8] sm:$0xf0]  ;;  %v4559_v9 = vld [vmem:[%s5421_s22 + $0x1cc] sm:$0xf] }
  0x88   : > { %v3640_v36 = vld [vmem:[%s5421_s22 + $0x248] sm:$0xf]  ;;  %s5126_s25 = scalar_lea.hbm %s6191_s15, 128 }
  0x89   : > { %1404 = vmatpush.bf16.msra.mxu0 %v3717_v54  ;;  %v3493_v54 = vor.u32 %v4538_v51, %v3490_v52  ;;  %v3450_v51 = vld [vmem:[%s5421_s22 + $0xd8] sm:$0xf0] }
  0x8a   : > { %1432 = vmatpush.bf16.msra.mxu2 %v3593_v57  ;;  %1418 = vmatpush.bf16.msra.mxu1 %v3465_v2  ;;  %v4541_v57 = vld [vmem:[%s5421_s22 + $0x134] sm:$0xf0]  ;;  %v3477_v2 = vor.u32 %v4534_v63, %v3474_v0  ;;  %v4523_v0 = vld [vmem:[%s5421_s22 + $0xac] sm:$0xf] }
  0x8b   : > { %1394 = vmatpush.bf16.msrb.mxu3 %v3525_v30  ;;  %v3497_v59 = vor.u32 %v4541_v57, %v3496_v56  ;;  %v4597_v30 = vld [vmem:[%s5421_s22 + $0x2f4] sm:$0xf0]  ;;  %v3705_v57 = vor.u32 %v4593_v49, %v3704_v43  ;;  %v3642_v43 = vld [vmem:[%s5421_s22 + $0x258] sm:$0xf0] }
  0x8c   : > { %v4589_v63 = vld [vmem:[%s5421_s22 + $0x2b4] sm:$0xf0] }
  0x8d   : > { %1405 = vmatpush.bf16.msra.mxu0 %v3701_v3  ;;  %v3602_v3 = vld [vmem:[%s5421_s22 + $0x210] sm:$0xf0] }
  0x8e   : > { %1433 = vmatpush.bf16.msra.mxu2 %v3577_v6  ;;  %1419 = vmatpush.bf16.msra.mxu1 %v3449_v12  ;;  %v3605_v6 = vor.u32 %v4566_v1, %v3602_v3  ;;  %v4505_v12 = vld [vmem:[%s5421_s22 + $0x14] sm:$0xf0]  ;;  %v3434_v3 = vld [vmem:[%s5421_s22 + $0xb8] sm:$0xf0] }
  0x8f   : > { %1395 = vmatpush.bf16.msrb.mxu3 %v3509_v42  ;;  %v3721_v42 = vor.u32 %v4597_v30, %v3720_v29  ;;  %v4579_v30 = vld [vmem:[%s5421_s22 + $0x26c] sm:$0xf] }
  0x91   : > { %1406 = vmatpush.bf16.msra.mxu0 %v3685_v13  ;;  %v3353_v13 = vor.u32 %v4505_v12, %v3352_v11  ;;  %v3437_v11 = vor.u32 %v4523_v0, %v3434_v3  ;;  %v3693_v12 = vor.u32 %v4587_v4, %v3690_v5  ;;  %v4503_v0 = vld [vmem:[%s5421_s22 + $0xc] sm:$0xf]  ;;  %v3610_v4 = vld [vmem:[%s5421_s22 + $0x218] sm:$0xf0] }
  0x92   : > { %1434 = vmatpush.bf16.msra.mxu2 %v3561_v14  ;;  %1420 = vmatpush.bf16.msra.mxu1 %v3433_v26  ;;  %v661_v14 = vld [vmem:[%s5413_s16] sm:$0x7]  ;;  %v4567_v3 = vld [vmem:[%s5421_s22 + $0x20c] sm:$0xf]  ;;  %s3334_s16 = sshll.u32 %s5409_s9, 1 }
  0x93   : > { %1396 = vmatpush.bf16.msrb.mxu3 %v3493_v54  ;;  %v663_v17 = vperm.slane %v661_v14, 0  ;;  %v664_v18 = vperm.slane %v661_v14, 1  ;;  %v4591_v54 = vld [vmem:[%s5421_s22 + $0x2cc] sm:$0xf] }
  0x94   : > { %v3709_v61 = vor.u32 %v4591_v54, %v3706_v55  ;;  %v3370_v54 = vld [vmem:[%s5421_s22 + $0x38] sm:$0xf0] }
  0x95   : > { %1407 = vmatpush.bf16.msra.mxu0 %v3669_v22  ;;  %v665_v22 = vperm.slane %v661_v14, 2  ;;  %v4585_v14 = vld [vmem:[%s5421_s22 + $0x294] sm:$0xf0] }
  0x96   : > { %1435 = vmatpush.bf16.msra.mxu2 %v3545_v23  ;;  %1421 = vmatpush.bf16.msra.mxu1 %v3417_v38 }
  0x97   : > { %1397 = vmatpush.bf16.msrb.mxu3 %v3477_v2 }
  0x99   : > { %1408 = vmatpush.bf16.msra.mxu0 %v3653_v34 }
  0x9a   : > { %1436 = vmatpush.bf16.msra.mxu2 %v3529_v35  ;;  %1422 = vmatpush.bf16.msra.mxu1 %v3401_v50  ;;  %v3466_v35 = vld [vmem:[%s5421_s22 + $0xf8] sm:$0xf0]  ;;  %v4527_v50 = vld [vmem:[%s5421_s22 + $0xcc] sm:$0xf] }
  0x9b   : > { %v3453_v60 = vor.u32 %v4527_v50, %v3450_v51  ;;  %v3624_v50 = vld [vmem:[%s5421_s22 + $0x228] sm:$0xf] }
  0x9d   : > { %1409 = vmatpush.bf16.msra.mxu0 %v3637_v46 }
  0x9e   : > { %1437 = vmatpush.bf16.msra.mxu2 %v3513_v47  ;;  %1423 = vmatpush.bf16.msra.mxu1 %v3385_v62  ;;  %v3469_v47 = vor.u32 %v4531_v33, %v3466_v35  ;;  %v3688_v62 = vld [vmem:[%s5421_s22 + $0x2a8] sm:$0xf]  ;;  %v3546_v33 = vld [vmem:[%s5421_s22 + $0x198] sm:$0xf0] }
  0x9f   : > { %v3689_v8 = vor.u32 %v4589_v63, %v3688_v62  ;;  %v3608_v62 = vld [vmem:[%s5421_s22 + $0x208] sm:$0xf]  ;;  %v4569_v63 = vld [vmem:[%s5421_s22 + $0x214] sm:$0xf0] }
  0xa1   : > { %1410 = vmatpush.bf16.msra.mxu0 %v3621_v58  ;;  %v4563_v58 = vld [vmem:[%s5421_s22 + $0x1ec] sm:$0xf] }
  0xa2   : > { %1438 = vmatpush.bf16.msra.mxu2 %v3497_v59  ;;  %1424 = vmatpush.bf16.msra.mxu1 %v3369_v10  ;;  %v3594_v59 = vld [vmem:[%s5421_s22 + $0x1f8] sm:$0xf0] }
  0xa3   : > { %v3578_v10 = vld [vmem:[%s5421_s22 + $0x1d8] sm:$0xf0] }
  0xa5   : > { %1411 = vmatpush.bf16.msra.mxu0 %v3605_v6  ;;  %v3597_v6 = vor.u32 %v4563_v58, %v3594_v59  ;;  %v4543_v58 = vld [vmem:[%s5421_s22 + $0x14c] sm:$0xf]  ;;  %v3514_v59 = vld [vmem:[%s5421_s22 + $0x158] sm:$0xf0] }
  0xa6   : > { %1439 = vmatpush.bf16.msra.mxu2 %v3481_v7  ;;  %1425 = vmatpush.bf16.msra.mxu1 %v3353_v13  ;;  %v3672_v13 = vld [vmem:[%s5421_s22 + $0x288] sm:$0xf]  ;;  %v3517_v5 = vor.u32 %v4543_v58, %v3514_v59  ;;  %v4600_v58 = vld [vmem:[%s5431_s29 + $0xc] sm:$0xf0]  ;;  %v4626_v59 = vld [vmem:[%s5431_s29 + $0xe4] sm:$0xf] }
  0xe5   : > { %v700_v15 = vpop.f32.mrf.mxu0  ;;  %v714_v16 = vpop.f32.mrf.mxu1 }
  0xe6   : > { %v701_v19 = vadd.f32 %v700_v15, %v663_v17  ;;  %v715_v20 = vadd.f32 %v714_v16, %v664_v18  ;;  %v4519_v15 = vld [vmem:[%s5421_s22 + $0x8c] sm:$0xf]  ;;  %v3418_v16 = vld [vmem:[%s5421_s22 + $0x98] sm:$0xf0] }
  0xe8   : > { %v733_v25 = vmul.f32 0.1, %v701_v19  ;;  %v734_v26 = vmul.f32 0.1, %v715_v20 }
  0xea   : > { %v739_v38 = vmax.f32 %v701_v19, %v733_v25  ;;  %v740_v39 = vmax.f32 %v715_v20, %v734_v26  ;;  %v3581_v19 = vor.u32 %v4559_v9, %v3578_v10  ;;  %v3673_v20 = vor.u32 %v4585_v14, %v3672_v13  ;;  %v3656_v25 = vld [vmem:[%s5421_s22 + $0x268] sm:$0xf]  ;;  %v4581_v26 = vld [vmem:[%s5421_s22 + $0x274] sm:$0xf0]  ;;  %v3498_v10 = vld [vmem:[%s5421_s22 + $0x138] sm:$0xf0] }
  0xeb   : > { %v4628_v9 = vld [vmem:[%s5431_s29 + $0xec] sm:$0xf0]  ;;  %v3609_v13 = vor.u32 %v4569_v63, %v3608_v62  ;;  %v4080_v63 = vld [vmem:[%s5431_s29 + $0x2c0] sm:$0xf] }
  0xec   : > { %v728_v21 = vpop.f32.mrf.mxu2 }
  0xed   : > { %v702_v23 = vpop.f32.mrf.mxu0  ;;  %v716_v24 = vpop.f32.mrf.mxu1  ;;  %v729_v34 = vadd.f32 %v728_v21, %v665_v22  ;;  %v4555_v21 = vld [vmem:[%s5421_s22 + $0x1ac] sm:$0xf] }
  0xee   : > { %v703_v27 = vadd.f32 %v702_v23, %v663_v17  ;;  %v717_v28 = vadd.f32 %v716_v24, %v664_v18  ;;  %v4583_v17 = vld [vmem:[%s5421_s22 + $0x28c] sm:$0xf]  ;;  %v3674_v18 = vld [vmem:[%s5421_s22 + $0x298] sm:$0xf0]  ;;  %v3421_v23 = vor.u32 %v4519_v15, %v3418_v16  ;;  %v3613_v15 = vor.u32 %v4567_v3, %v3610_v4  ;;  %v3888_v4 = vld [vmem:[%s5431_s29 + $0x140] sm:$0xf] }
  0xef   : > { %v735_v52 = vmul.f32 0.1, %v729_v34  ;;  %v3677_v24 = vor.u32 %v4583_v17, %v3674_v18  ;;  %v4535_v16 = vld [vmem:[%s5421_s22 + $0x10c] sm:$0xf]  ;;  %v3482_v17 = vld [vmem:[%s5421_s22 + $0x118] sm:$0xf0] }
  0xf0   : > { %v736_v31 = vmul.f32 0.1, %v703_v27  ;;  %v737_v32 = vmul.f32 0.1, %v717_v28  ;;  %v3826_v3 = vld [vmem:[%s5431_s29 + $0xd0] sm:$0xf0] }
  0xf1   : > { %v741_v1 = vmax.f32 %v729_v34, %v735_v52  ;;  %v3657_v34 = vor.u32 %v4581_v26, %v3656_v25  ;;  %v4573_v52 = vld [vmem:[%s5421_s22 + $0x234] sm:$0xf0]  ;;  %v4224_v25 = vld [vmem:[%s5431_s29 + $0x3e0] sm:$0xf] }
  0xf2   : > { %v742_v40 = vmax.f32 %v703_v27, %v736_v31  ;;  %v743_v41 = vmax.f32 %v717_v28, %v737_v32  ;;  %v4515_v27 = vld [vmem:[%s5421_s22 + $0x6c] sm:$0xf]  ;;  %v3402_v28 = vld [vmem:[%s5421_s22 + $0x78] sm:$0xf0]  ;;  %v4724_v26 = vld [vmem:[%s5431_s29 + $0x3ec] sm:$0xf0] }
  0xf3   : > { %v3658_v31 = vld [vmem:[%s5421_s22 + $0x278] sm:$0xf0]  ;;  %v4551_v32 = vld [vmem:[%s5421_s22 + $0x18c] sm:$0xf]  ;;  %v3405_v35 = vor.u32 %v4515_v27, %v3402_v28  ;;  %v4096_v27 = vld [vmem:[%s5431_s29 + $0x2e0] sm:$0xf] }
  0xf4   : > { %v5596_v44 = vpack.c.bf16 %v742_v40, %v739_v38  ;;  %v5598_v45 = vpack.c.bf16 %v743_v41, %v740_v39  ;;  %v730_v46 = vpop.f32.mrf.mxu2  ;;  %v3661_v37 = vor.u32 %v4579_v30, %v3658_v31  ;;  %v4577_v38 = vld [vmem:[%s5421_s22 + $0x254] sm:$0xf0]  ;;  %v4511_v39 = vld [vmem:[%s5421_s22 + $0x4c] sm:$0xf]  ;;  %v3386_v40 = vld [vmem:[%s5421_s22 + $0x58] sm:$0xf0]  ;;  %v3549_v41 = vor.u32 %v4551_v32, %v3546_v33 }
  0xf5   : > { %v731_v53 = vadd.f32 %v730_v46, %v665_v22  ;;  %v3562_v22 = vld [vmem:[%s5421_s22 + $0x1b8] sm:$0xf0]  ;;  %v4547_v46 = vld [vmem:[%s5421_s22 + $0x16c] sm:$0xf]  ;;  %v3389_v49 = vor.u32 %v4511_v39, %v3386_v40  ;;  %v4692_v28 = vld [vmem:[%s5431_s29 + $0x2ec] sm:$0xf0]  ;;  %v4225_v30 = vor.u32 %v4724_v26, %v4224_v25  ;;  %v3485_v31 = vor.u32 %v4535_v16, %v3482_v17 }
  0xf6   : > { %1342 = vmatmul.bf16.vlgmr.msra.gmra.mxu3 %v5596_v44  ;;  %1356 = vmatmul.bf16.vlgmr.msrb.gmra.mxu0 %v5598_v45  ;;  %v3565_v29 = vor.u32 %v4555_v21, %v3562_v22  ;;  %v4624_v21 = vld [vmem:[%s5431_s29 + $0xcc] sm:$0xf0]  ;;  %v3808_v32 = vld [vmem:[%s5431_s29 + $0xa0] sm:$0xf]  ;;  %v3810_v16 = vld [vmem:[%s5431_s29 + $0xb0] sm:$0xf0] }
  0xf7   : > { %v738_v56 = vmul.f32 0.1, %v731_v53  ;;  %1384 = vmatmul.bf16.vlgmr.msrb.gmra.mxu2 %v5596_v44  ;;  %1446 = vmatpush.bf16.msra.mxu3 %v3721_v42  ;;  %v4575_v42 = vld [vmem:[%s5421_s22 + $0x24c] sm:$0xf]  ;;  %v4620_v33 = vld [vmem:[%s5431_s29 + $0xac] sm:$0xf0] }
  0xf8   : > { %1460 = vmatpush.bf16.msrb.mxu0 %v3469_v47  ;;  %1488 = vmatpush.bf16.msrb.mxu2 %v3725_v48  ;;  %v3530_v47 = vld [vmem:[%s5421_s22 + $0x178] sm:$0xf0]  ;;  %v3641_v48 = vor.u32 %v4577_v38, %v3640_v36  ;;  %v3645_v51 = vor.u32 %v4575_v42, %v3642_v43  ;;  %v4652_v36 = vld [vmem:[%s5431_s29 + $0x1ac] sm:$0xf0]  ;;  %v3809_v38 = vor.u32 %v4620_v33, %v3808_v32  ;;  %v3792_v39 = vld [vmem:[%s5431_s29 + $0x80] sm:$0xf] }
  0xf9   : > { %v744_v2 = vmax.f32 %v731_v53, %v738_v56  ;;  %v4507_v53 = vld [vmem:[%s5421_s22 + $0x2c] sm:$0xf]  ;;  %v3533_v55 = vor.u32 %v4547_v46, %v3530_v47  ;;  %v4616_v40 = vld [vmem:[%s5431_s29 + $0x8c] sm:$0xf0]  ;;  %v3776_v43 = vld [vmem:[%s5431_s29 + $0x60] sm:$0xf] }
  0xfa   : > { %v4571_v56 = vld [vmem:[%s5421_s22 + $0x22c] sm:$0xf]  ;;  %v4648_v42 = vld [vmem:[%s5431_s29 + $0x18c] sm:$0xf0]  ;;  %v4176_v32 = vld [vmem:[%s5431_s29 + $0x380] sm:$0xf] }
  0xfb   : > { %v5616_v7 = vpack.c.bf16 %v744_v2, %v741_v1  ;;  %1447 = vmatpush.bf16.msra.mxu3 %v3705_v57  ;;  %v3626_v57 = vld [vmem:[%s5421_s22 + $0x238] sm:$0xf0]  ;;  %v4612_v46 = vld [vmem:[%s5431_s29 + $0x6c] sm:$0xf0] }
  0xfc   : > { %1461 = vmatpush.bf16.msrb.mxu0 %v3453_v60  ;;  %1489 = vmatpush.bf16.msrb.mxu2 %v3709_v61  ;;  %v3625_v60 = vor.u32 %v4573_v52, %v3624_v50  ;;  %v3373_v61 = vor.u32 %v4507_v53, %v3370_v54  ;;  %v3629_v1 = vor.u32 %v4571_v56, %v3626_v57  ;;  %v3354_v2 = vld [vmem:[%s5421_s22 + $0x18] sm:$0xf0]  ;;  %v4608_v52 = vld [vmem:[%s5431_s29 + $0x4c] sm:$0xf0]  ;;  %v3744_v54 = vld [vmem:[%s5431_s29 + $0x20] sm:$0xf] }
  0xfd   : > { %1370 = vmatmul.bf16.vlgmr.msrb.gmra.mxu1 %v5616_v7  ;;  %v3357_v14 = vor.u32 %v4503_v0, %v3354_v2  ;;  %v3777_v50 = vor.u32 %v4612_v46, %v3776_v43  ;;  %v3728_v57 = vld [vmem:[%s5431_s29] sm:$0xf]  ;;  %v4688_v0 = vld [vmem:[%s5431_s29 + $0x2cc] sm:$0xf0] }
  0xfe   : > { %1474 = vmatpush.bf16.msrb.mxu1 %v3597_v6  ;;  %v4539_v6 = vld [vmem:[%s5421_s22 + $0x12c] sm:$0xf]  ;;  %v4081_v2 = vor.u32 %v4688_v0, %v4080_v63  ;;  %v4680_v25 = vld [vmem:[%s5431_s29 + $0x28c] sm:$0xf0]  ;;  %v4160_v43 = vld [vmem:[%s5431_s29 + $0x360] sm:$0xf] }
  0xff   : > { %1448 = vmatpush.bf16.msra.mxu3 %v3689_v8  ;;  %v3840_v8 = vld [vmem:[%s5431_s29 + $0xe0] sm:$0xf]  ;;  %v4708_v46 = vld [vmem:[%s5431_s29 + $0x36c] sm:$0xf0]  ;;  %s559_s22 = scalar_lea.vmem [#allocation13], %s3334_s16 }
 0x100   : > { %1462 = vmatpush.bf16.msrb.mxu0 %v3437_v11  ;;  %1490 = vmatpush.bf16.msrb.mxu2 %v3693_v12  ;;  %v3968_v11 = vld [vmem:[%s5431_s29 + $0x1e0] sm:$0xf]  ;;  %v4660_v12 = vld [vmem:[%s5431_s29 + $0x1ec] sm:$0xf0]  ;;  %v3841_v18 = vor.u32 %v4628_v9, %v3840_v8 }
 0x101   : > { %v3969_v22 = vor.u32 %v4660_v12, %v3968_v11  ;;  %v4208_v9 = vld [vmem:[%s5431_s29 + $0x3c0] sm:$0xf]  ;;  %v4668_v63 = vld [vmem:[%s5431_s29 + $0x22c] sm:$0xf0] }
 0x102   : > { %1475 = vmatpush.bf16.msrb.mxu1 %v3581_v19  ;;  %v3501_v19 = vor.u32 %v4539_v6, %v3498_v10  ;;  %v4720_v10 = vld [vmem:[%s5431_s29 + $0x3cc] sm:$0xf0]  ;;  %v4064_v11 = vld [vmem:[%s5431_s29 + $0x2a0] sm:$0xf] }
 0x103   : > { %1449 = vmatpush.bf16.msra.mxu3 %v3673_v20  ;;  %v3824_v20 = vld [vmem:[%s5431_s29 + $0xc0] sm:$0xf]  ;;  %v4209_v12 = vor.u32 %v4720_v10, %v4208_v9  ;;  %v3922_v9 = vld [vmem:[%s5431_s29 + $0x190] sm:$0xf0] }
 0x104   : > { %1463 = vmatpush.bf16.msrb.mxu0 %v3421_v23  ;;  %1491 = vmatpush.bf16.msrb.mxu2 %v3677_v24  ;;  %v3952_v23 = vld [vmem:[%s5431_s29 + $0x1c0] sm:$0xf]  ;;  %v4656_v24 = vld [vmem:[%s5431_s29 + $0x1cc] sm:$0xf0] }
 0x106   : > { %1476 = vmatpush.bf16.msrb.mxu1 %v3565_v29  ;;  %1398 = vmatmul.bf16.vlgmr.msrb.gmra.mxu3 %v5598_v45  ;;  %v3825_v29 = vor.u32 %v4624_v21, %v3824_v20  ;;  %v4192_v20 = vld [vmem:[%s5431_s29 + $0x3a0] sm:$0xf] }
 0x107   : > { %1412 = vmatmul.bf16.vlgmr.msra.gmra.mxu0 %v5616_v7  ;;  %1440 = vmatmul.bf16.vlgmr.msra.gmra.mxu2 %v5598_v45 }
 0x108   : > { %1450 = vmatpush.bf16.msra.mxu3 %v3657_v34  ;;  %1464 = vmatpush.bf16.msrb.mxu0 %v3405_v35  ;;  %v3953_v34 = vor.u32 %v4656_v24, %v3952_v23  ;;  %v3936_v35 = vld [vmem:[%s5431_s29 + $0x1a0] sm:$0xf] }
 0x109   : > { %1492 = vmatpush.bf16.msrb.mxu2 %v3661_v37  ;;  %v4097_v37 = vor.u32 %v4692_v28, %v4096_v27  ;;  %v4048_v24 = vld [vmem:[%s5431_s29 + $0x280] sm:$0xf]  ;;  %v4614_v27 = vld [vmem:[%s5431_s29 + $0x84] sm:$0xf]  ;;  %v3794_v28 = vld [vmem:[%s5431_s29 + $0x90] sm:$0xf0] }
 0x10a   : > { %1477 = vmatpush.bf16.msrb.mxu1 %v3549_v41  ;;  %v3937_v41 = vor.u32 %v4652_v36, %v3936_v35  ;;  %v4049_v26 = vor.u32 %v4680_v25, %v4048_v24  ;;  %v4658_v35 = vld [vmem:[%s5431_s29 + $0x1e4] sm:$0xf]  ;;  %v3970_v36 = vld [vmem:[%s5431_s29 + $0x1f0] sm:$0xf0] }
 0x10b   : > { %v3906_v24 = vld [vmem:[%s5431_s29 + $0x170] sm:$0xf0]  ;;  %v4722_v25 = vld [vmem:[%s5431_s29 + $0x3e4] sm:$0xf] }
 0x10c   : > { %1451 = vmatpush.bf16.msra.mxu3 %v3641_v48  ;;  %1465 = vmatpush.bf16.msrb.mxu0 %v3389_v49  ;;  %v3904_v48 = vld [vmem:[%s5431_s29 + $0x160] sm:$0xf]  ;;  %v4644_v49 = vld [vmem:[%s5431_s29 + $0x16c] sm:$0xf0] }
 0x10d   : > { %1493 = vmatpush.bf16.msrb.mxu2 %v3645_v51  ;;  %1426 = vmatmul.bf16.vlgmr.msra.gmra.mxu1 %v5596_v44  ;;  %v3760_v51 = vld [vmem:[%s5431_s29 + $0x40] sm:$0xf] }
 0x10e   : > { %1478 = vmatpush.bf16.msrb.mxu1 %v3533_v55  ;;  %v3761_v53 = vor.u32 %v4608_v52, %v3760_v51  ;;  %v4604_v55 = vld [vmem:[%s5431_s29 + $0x2c] sm:$0xf0]  ;;  %v4016_v51 = vld [vmem:[%s5431_s29 + $0x240] sm:$0xf] }
 0x10f   : > { %v3745_v56 = vor.u32 %v4604_v55, %v3744_v54  ;;  %v4672_v52 = vld [vmem:[%s5431_s29 + $0x24c] sm:$0xf0]  ;;  %v3762_v54 = vld [vmem:[%s5431_s29 + $0x50] sm:$0xf0] }
 0x110   : > { %1452 = vmatpush.bf16.msra.mxu3 %v3625_v60  ;;  %1466 = vmatpush.bf16.msrb.mxu0 %v3373_v61  ;;  %v3842_v60 = vld [vmem:[%s5431_s29 + $0xf0] sm:$0xf0]  ;;  %v3729_v61 = vor.u32 %v4600_v58, %v3728_v57  ;;  %v4704_v57 = vld [vmem:[%s5431_s29 + $0x34c] sm:$0xf0] }
 0x111   : > { %1494 = vmatpush.bf16.msrb.mxu2 %v3629_v1  ;;  %v3845_v62 = vor.u32 %v4626_v59, %v3842_v60  ;;  %v4622_v1 = vld [vmem:[%s5431_s29 + $0xc4] sm:$0xf]  ;;  %v3938_v60 = vld [vmem:[%s5431_s29 + $0x1b0] sm:$0xf0] }
 0x112   : > { %1479 = vmatpush.bf16.msrb.mxu1 %v3517_v5  ;;  %v4640_v5 = vld [vmem:[%s5431_s29 + $0x14c] sm:$0xf0]  ;;  %v3829_v6 = vor.u32 %v4622_v1, %v3826_v3  ;;  %v4650_v59 = vld [vmem:[%s5431_s29 + $0x1a4] sm:$0xf] }
 0x113   : > { %v3889_v8 = vor.u32 %v4640_v5, %v3888_v4  ;;  %v4602_v1 = vld [vmem:[%s5431_s29 + $0x24] sm:$0xf]  ;;  %v4128_v4 = vld [vmem:[%s5431_s29 + $0x320] sm:$0xf]  ;;  %v4700_v5 = vld [vmem:[%s5431_s29 + $0x32c] sm:$0xf0] }
 0x114   : > { %1453 = vmatpush.bf16.msra.mxu3 %v3609_v13  ;;  %1467 = vmatpush.bf16.msrb.mxu0 %v3357_v14  ;;  %v4684_v13 = vld [vmem:[%s5431_s29 + $0x2ac] sm:$0xf0] }
 0x115   : > { %1495 = vmatpush.bf16.msrb.mxu2 %v3613_v15  ;;  %v4065_v14 = vor.u32 %v4684_v13, %v4064_v11  ;;  %v4618_v15 = vld [vmem:[%s5431_s29 + $0xa4] sm:$0xf]  ;;  %v3984_v11 = vld [vmem:[%s5431_s29 + $0x200] sm:$0xf] }
 0x116   : > { %1480 = vmatpush.bf16.msrb.mxu1 %v3501_v19  ;;  %v3813_v17 = vor.u32 %v4618_v15, %v3810_v16  ;;  %v4636_v19 = vld [vmem:[%s5431_s29 + $0x12c] sm:$0xf0]  ;;  %v3730_v15 = vld [vmem:[%s5431_s29 + $0x10] sm:$0xf0]  ;;  %v4690_v16 = vld [vmem:[%s5431_s29 + $0x2e4] sm:$0xf] }
 0x117   : > { %1454 = vmatmul.bf16.vlgmr.msra.gmra.mxu3 %v5616_v7  ;;  %1468 = vmatmul.bf16.vlgmr.msrb.gmra.mxu0 %v5596_v44  ;;  %v3920_v44 = vld [vmem:[%s5431_s29 + $0x180] sm:$0xf] }
 0x118   : > { %2300 = vmatpush.bf16.msrb.mxu3 %v3841_v18  ;;  %2314 = vmatpush.bf16.msra.mxu0 %v3969_v22  ;;  %v3921_v47 = vor.u32 %v4648_v42, %v3920_v44  ;;  %v3872_v18 = vld [vmem:[%s5431_s29 + $0x120] sm:$0xf]  ;;  %v4716_v22 = vld [vmem:[%s5431_s29 + $0x3ac] sm:$0xf0]  ;;  %v4610_v44 = vld [vmem:[%s5431_s29 + $0x64] sm:$0xf] }
 0x119   : > { %1496 = vmatmul.bf16.vlgmr.msrb.gmra.mxu2 %v5616_v7  ;;  %v3793_v7 = vor.u32 %v4616_v40, %v3792_v39  ;;  %v3873_v21 = vor.u32 %v4636_v19, %v3872_v18  ;;  %v4193_v23 = vor.u32 %v4716_v22, %v4192_v20  ;;  %v4032_v39 = vld [vmem:[%s5431_s29 + $0x260] sm:$0xf]  ;;  %v4676_v40 = vld [vmem:[%s5431_s29 + $0x26c] sm:$0xf0]  ;;  %v3778_v42 = vld [vmem:[%s5431_s29 + $0x70] sm:$0xf0] }
 0x11a   : > { %2342 = vmatpush.bf16.msra.mxu2 %v4225_v30  ;;  %1481 = vmatpush.bf16.msrb.mxu1 %v3485_v31  ;;  %v3856_v30 = vld [vmem:[%s5431_s29 + $0x100] sm:$0xf]  ;;  %v4632_v31 = vld [vmem:[%s5431_s29 + $0x10c] sm:$0xf0]  ;;  %v4098_v18 = vld [vmem:[%s5431_s29 + $0x2f0] sm:$0xf0] }
 0x11b   : > { %v3857_v33 = vor.u32 %v4632_v31, %v3856_v30  ;;  %v4112_v19 = vld [vmem:[%s5431_s29 + $0x300] sm:$0xf]  ;;  %v4696_v20 = vld [vmem:[%s5431_s29 + $0x30c] sm:$0xf0]  ;;  %v4082_v30 = vld [vmem:[%s5431_s29 + $0x2d0] sm:$0xf0] }
 0x11c   : > { %2301 = vmatpush.bf16.msrb.mxu3 %v3825_v29  ;;  %2315 = vmatpush.bf16.msra.mxu0 %v3953_v34  ;;  %v3797_v29 = vor.u32 %v4614_v27, %v3794_v28  ;;  %v4712_v34 = vld [vmem:[%s5431_s29 + $0x38c] sm:$0xf0]  ;;  %v4113_v22 = vor.u32 %v4696_v20, %v4112_v19  ;;  %v5768_v31 = vld [vmem:[%s5429_s27] sm:$0xf]  ;;  %v4666_v20 = vld [vmem:[%s5431_s29 + $0x224] sm:$0xf] }
 0x11d   : > { %1482 = vmatmul.bf16.vlgmr.msrb.gmra.mxu1 %v5598_v45  ;;  %v3905_v45 = vor.u32 %v4644_v49, %v3904_v48  ;;  %v4654_v48 = vld [vmem:[%s5431_s29 + $0x1c4] sm:$0xf]  ;;  %v3954_v49 = vld [vmem:[%s5431_s29 + $0x1d0] sm:$0xf0]  ;;  %s4790_s27 = sshll.u32 %s5192_s12, 5  ;;  %s3051_s12 = scalar_lea.sflag [#allocation4], %s5409_s9 }
 0x11e   : > { %2328 = vmatpush.bf16.msra.mxu1 %v4097_v37  ;;  %2343 = vmatpush.bf16.msra.mxu2 %v4209_v12  ;;  %v4177_v37 = vor.u32 %v4712_v34, %v4176_v32  ;;  %v4664_v12 = vld [vmem:[%s5431_s29 + $0x20c] sm:$0xf0]  ;;  %v3890_v34 = vld [vmem:[%s5431_s29 + $0x150] sm:$0xf0] }
 0x11f   : > { %v3985_v13 = vor.u32 %v4664_v12, %v3984_v11 }
 0x120   : > { %2302 = vmatpush.bf16.msrb.mxu3 %v3809_v38  ;;  %2316 = vmatpush.bf16.msra.mxu0 %v3937_v41  ;;  %v3973_v38 = vor.u32 %v4658_v35, %v3970_v36  ;;  %v4033_v41 = vor.u32 %v4676_v40, %v4032_v39  ;;  %v4718_v35 = vld [vmem:[%s5431_s29 + $0x3c4] sm:$0xf] }
 0x121   : > { %v4682_v40 = vld [vmem:[%s5431_s29 + $0x2a4] sm:$0xf] }
 0x122   : > { %2329 = vmatpush.bf16.msra.mxu1 %v4081_v2  ;;  %2344 = vmatpush.bf16.msra.mxu2 %v4193_v23  ;;  %v3746_v2 = vld [vmem:[%s5431_s29 + $0x30] sm:$0xf0]  ;;  %v4642_v23 = vld [vmem:[%s5431_s29 + $0x164] sm:$0xf] }
 0x123   : > { %v3749_v3 = vor.u32 %v4602_v1, %v3746_v2  ;;  %v3909_v27 = vor.u32 %v4642_v23, %v3906_v24 }
 0x124   : > { %2303 = vmatpush.bf16.msrb.mxu3 %v3793_v7  ;;  %2317 = vmatpush.bf16.msra.mxu0 %v3921_v47  ;;  %v3781_v7 = vor.u32 %v4610_v44, %v3778_v42  ;;  %v4161_v47 = vor.u32 %v4708_v46, %v4160_v43  ;;  %v846_v44 = vperm.slane %v5768_v31, 0  ;;  %v3874_v43 = vld [vmem:[%s5431_s29 + $0x130] sm:$0xf0]  ;;  %v4714_v46 = vld [vmem:[%s5431_s29 + $0x3a4] sm:$0xf] }
 0x126   : > { %2330 = vmatpush.bf16.msra.mxu1 %v4065_v14  ;;  %2345 = vmatpush.bf16.msra.mxu2 %v4177_v37  ;;  %v4598_v14 = vld [vmem:[%s5431_s29 + $0x4] sm:$0xf] }
 0x128   : > { %2304 = vmatpush.bf16.msrb.mxu3 %v3777_v50  ;;  %2318 = vmatpush.bf16.msra.mxu0 %v3905_v45  ;;  %v3957_v50 = vor.u32 %v4654_v48, %v3954_v49  ;;  %v4017_v45 = vor.u32 %v4672_v52, %v4016_v51  ;;  %v4194_v48 = vld [vmem:[%s5431_s29 + $0x3b0] sm:$0xf0] }
 0x129   : > { %v4197_v49 = vor.u32 %v4714_v46, %v4194_v48  ;;  %v4050_v51 = vld [vmem:[%s5431_s29 + $0x290] sm:$0xf0] }
 0x12a   : > { %2331 = vmatpush.bf16.msra.mxu1 %v4049_v26  ;;  %2346 = vmatpush.bf16.msra.mxu2 %v4161_v47  ;;  %v4226_v26 = vld [vmem:[%s5431_s29 + $0x3f0] sm:$0xf0] }
 0x12b   : > { %v4229_v28 = vor.u32 %v4722_v25, %v4226_v26  ;;  %v4698_v26 = vld [vmem:[%s5431_s29 + $0x324] sm:$0xf] }
 0x12c   : > { %2305 = vmatpush.bf16.msrb.mxu3 %v3761_v53  ;;  %2319 = vmatpush.bf16.msra.mxu0 %v3889_v8  ;;  %v4606_v53 = vld [vmem:[%s5431_s29 + $0x44] sm:$0xf] }
 0x12d   : > { %v3765_v55 = vor.u32 %v4606_v53, %v3762_v54  ;;  %v4646_v8 = vld [vmem:[%s5431_s29 + $0x184] sm:$0xf] }
 0x12e   : > { %2332 = vmatpush.bf16.msra.mxu1 %v4033_v41  ;;  %v3925_v10 = vor.u32 %v4646_v8, %v3922_v9  ;;  %v4066_v41 = vld [vmem:[%s5431_s29 + $0x2b0] sm:$0xf0] }
 0x12f   : > { %v4069_v42 = vor.u32 %v4682_v40, %v4066_v41  ;;  %v4018_v8 = vld [vmem:[%s5431_s29 + $0x250] sm:$0xf0] }
 0x130   : > { %2306 = vmatpush.bf16.msrb.mxu3 %v3745_v56  ;;  %2320 = vmatpush.bf16.msra.mxu0 %v3873_v21  ;;  %v4144_v56 = vld [vmem:[%s5431_s29 + $0x340] sm:$0xf]  ;;  %v4101_v21 = vor.u32 %v4690_v16, %v4098_v18  ;;  %v4146_v16 = vld [vmem:[%s5431_s29 + $0x350] sm:$0xf0] }
 0x131   : > { %v4145_v58 = vor.u32 %v4704_v57, %v4144_v56  ;;  %v4630_v56 = vld [vmem:[%s5431_s29 + $0x104] sm:$0xf]  ;;  %v3858_v57 = vld [vmem:[%s5431_s29 + $0x110] sm:$0xf0] }
 0x132   : > { %2333 = vmatpush.bf16.msra.mxu1 %v4017_v45 }
 0x133   : > { %2347 = vmatpush.bf16.msra.mxu2 %v4145_v58  ;;  %v4710_v58 = vld [vmem:[%s5431_s29 + $0x384] sm:$0xf] }
 0x134   : > { %2307 = vmatpush.bf16.msrb.mxu3 %v3729_v61  ;;  %2321 = vmatpush.bf16.msra.mxu0 %v3857_v33  ;;  %v3941_v61 = vor.u32 %v4650_v59, %v3938_v60  ;;  %v4638_v33 = vld [vmem:[%s5431_s29 + $0x144] sm:$0xf]  ;;  %v3861_v60 = vor.u32 %v4630_v56, %v3858_v57 }
 0x135   : > { %v3893_v37 = vor.u32 %v4638_v33, %v3890_v34  ;;  %v4662_v33 = vld [vmem:[%s5431_s29 + $0x204] sm:$0xf]  ;;  %v3986_v34 = vld [vmem:[%s5431_s29 + $0x210] sm:$0xf0] }
 0x138   : > { %2356 = vmatpush.bf16.msra.mxu3 %v3845_v62  ;;  %2370 = vmatpush.bf16.msrb.mxu0 %v3973_v38  ;;  %v4000_v62 = vld [vmem:[%s5431_s29 + $0x220] sm:$0xf]  ;;  %v4210_v38 = vld [vmem:[%s5431_s29 + $0x3d0] sm:$0xf0] }
 0x139   : > { %v4001_v0 = vor.u32 %v4668_v63, %v4000_v62  ;;  %v4213_v39 = vor.u32 %v4718_v35, %v4210_v38  ;;  %v4674_v63 = vld [vmem:[%s5431_s29 + $0x264] sm:$0xf] }
 0x13b   : > { %2334 = vmatpush.bf16.msra.mxu1 %v4001_v0  ;;  %v4034_v0 = vld [vmem:[%s5431_s29 + $0x270] sm:$0xf0] }
 0x13c   : > { %2357 = vmatpush.bf16.msra.mxu3 %v3829_v6  ;;  %2371 = vmatpush.bf16.msrb.mxu0 %v3957_v50  ;;  %v4129_v6 = vor.u32 %v4700_v5, %v4128_v4  ;;  %v4678_v50 = vld [vmem:[%s5431_s29 + $0x284] sm:$0xf]  ;;  %v4037_v1 = vor.u32 %v4674_v63, %v4034_v0  ;;  %v4162_v4 = vld [vmem:[%s5431_s29 + $0x370] sm:$0xf0]  ;;  %v3800_v63 = vld [vmem:[%s5431_s29 + $0x88] sm:$0xf] }
 0x13d   : > { %v4053_v45 = vor.u32 %v4678_v50, %v4050_v51  ;;  %v4625_v50 = vld [vmem:[%s5431_s29 + $0xd4] sm:$0xf0] }
 0x13e   : > { %2348 = vmatpush.bf16.msra.mxu2 %v4129_v6  ;;  %v4670_v6 = vld [vmem:[%s5431_s29 + $0x244] sm:$0xf]  ;;  %v4617_v0 = vld [vmem:[%s5431_s29 + $0x94] sm:$0xf0] }
 0x13f   : > { %2335 = vmatpush.bf16.msra.mxu1 %v3985_v13 }
 0x140   : > { %2358 = vmatpush.bf16.msra.mxu3 %v3813_v17  ;;  %2372 = vmatpush.bf16.msrb.mxu0 %v3941_v61  ;;  %v3733_v17 = vor.u32 %v4598_v14, %v3730_v15  ;;  %v4178_v61 = vld [vmem:[%s5431_s29 + $0x390] sm:$0xf0]  ;;  %v4702_v15 = vld [vmem:[%s5431_s29 + $0x344] sm:$0xf] }
 0x141   : > { %v4181_v62 = vor.u32 %v4710_v58, %v4178_v61 }
 0x142   : > { %2349 = vmatpush.bf16.msra.mxu2 %v4113_v22  ;;  %v847_v22 = vperm.slane %v5768_v31, 1 }
 0x143   : > { %2384 = vmatpush.bf16.msrb.mxu1 %v4101_v21  ;;  %v4002_v21 = vld [vmem:[%s5431_s29 + $0x230] sm:$0xf0] }
 0x144   : > { %2359 = vmatpush.bf16.msra.mxu3 %v3797_v29  ;;  %2373 = vmatpush.bf16.msrb.mxu0 %v3925_v10  ;;  %v4686_v29 = vld [vmem:[%s5431_s29 + $0x2c4] sm:$0xf]  ;;  %v4021_v10 = vor.u32 %v4670_v6, %v4018_v8  ;;  %v4005_v23 = vor.u32 %v4666_v20, %v4002_v21  ;;  %v3801_v6 = vor.u32 %v4617_v0, %v3800_v63  ;;  %v3768_v21 = vld [vmem:[%s5431_s29 + $0x48] sm:$0xf] }
 0x145   : > { %v4085_v32 = vor.u32 %v4686_v29, %v4082_v30  ;;  %v4629_v29 = vld [vmem:[%s5431_s29 + $0xf4] sm:$0xf0]  ;;  %v4232_v0 = vld [vmem:[%s5431_s29 + $0x3e8] sm:$0xf] }
 0x146   : > { %2398 = vmatpush.bf16.msrb.mxu2 %v4229_v28  ;;  %v3848_v28 = vld [vmem:[%s5431_s29 + $0xe8] sm:$0xf] }
 0x147   : > { %2385 = vmatpush.bf16.msrb.mxu1 %v4085_v32 }
 0x148   : > { %2360 = vmatpush.bf16.msra.mxu3 %v3781_v7  ;;  %2374 = vmatpush.bf16.msrb.mxu0 %v3909_v27  ;;  %v4634_v7 = vld [vmem:[%s5431_s29 + $0x124] sm:$0xf]  ;;  %v4130_v27 = vld [vmem:[%s5431_s29 + $0x330] sm:$0xf0] }
 0x149   : > { %v3877_v47 = vor.u32 %v4634_v7, %v3874_v43  ;;  %v4133_v30 = vor.u32 %v4698_v26, %v4130_v27  ;;  %v3849_v7 = vor.u32 %v4629_v29, %v3848_v28  ;;  %v3944_v28 = vld [vmem:[%s5431_s29 + $0x1a8] sm:$0xf]  ;;  %v4653_v29 = vld [vmem:[%s5431_s29 + $0x1b4] sm:$0xf0] }
 0x14a   : > { %2399 = vmatpush.bf16.msrb.mxu2 %v4213_v39 }
 0x14b   : > { %2386 = vmatpush.bf16.msrb.mxu1 %v4069_v42  ;;  %v4114_v42 = vld [vmem:[%s5431_s29 + $0x310] sm:$0xf0] }
 0x14c   : > { %2361 = vmatpush.bf16.msra.mxu3 %v3765_v55  ;;  %2375 = vmatpush.bf16.msrb.mxu0 %v3893_v37 }
 0x14e   : > { %2400 = vmatpush.bf16.msrb.mxu2 %v4197_v49  ;;  %v3832_v49 = vld [vmem:[%s5431_s29 + $0xc8] sm:$0xf] }
 0x14f   : > { %2387 = vmatpush.bf16.msrb.mxu1 %v4053_v45  ;;  %v3833_v51 = vor.u32 %v4625_v50, %v3832_v49  ;;  %v4601_v49 = vld [vmem:[%s5431_s29 + $0x14] sm:$0xf0] }
 0x150   : > { %2362 = vmatpush.bf16.msra.mxu3 %v3749_v3  ;;  %2376 = vmatpush.bf16.msrb.mxu0 %v3877_v47  ;;  %v4706_v3 = vld [vmem:[%s5431_s29 + $0x364] sm:$0xf] }
 0x151   : > { %v4165_v5 = vor.u32 %v4706_v3, %v4162_v4  ;;  %v3976_v3 = vld [vmem:[%s5431_s29 + $0x1e8] sm:$0xf]  ;;  %v4661_v4 = vld [vmem:[%s5431_s29 + $0x1f4] sm:$0xf0] }
 0x152   : > { %2401 = vmatpush.bf16.msrb.mxu2 %v4181_v62 }
 0x153   : > { %2388 = vmatpush.bf16.msrb.mxu1 %v4037_v1  ;;  %v848_v1 = vperm.slane %v5768_v31, 2 }
 0x154   : > { %2363 = vmatpush.bf16.msra.mxu3 %v3733_v17  ;;  %2377 = vmatpush.bf16.msrb.mxu0 %v3861_v60  ;;  %v4149_v17 = vor.u32 %v4702_v15, %v4146_v16 }
 0x156   : > { %2402 = vmatpush.bf16.msrb.mxu2 %v4165_v5  ;;  %v849_v5 = vperm.slane %v5768_v31, 3 }
 0x157   : > { %2389 = vmatpush.bf16.msrb.mxu1 %v4021_v10  ;;  %v3784_v10 = vld [vmem:[%s5431_s29 + $0x68] sm:$0xf] }
 0x15a   : > { %2403 = vmatpush.bf16.msrb.mxu2 %v4149_v17  ;;  %v3960_v17 = vld [vmem:[%s5431_s29 + $0x1c8] sm:$0xf] }
 0x15b   : > { %2390 = vmatpush.bf16.msrb.mxu1 %v4005_v23 }
 0x15e   : > { %2404 = vmatpush.bf16.msrb.mxu2 %v4133_v30 }
 0x173   : > { %v1357_v36 = vpop.f32.mrf.mxu0 }
 0x179   : > { %v1343_v52 = vpop.f32.mrf.mxu3 }
 0x17a   : > { %v1344_v53 = vadd.f32 %v1343_v52, %v846_v44  ;;  %v1371_v54 = vpop.f32.mrf.mxu1  ;;  %v1385_v55 = vpop.f32.mrf.mxu2 }
 0x17b   : > { %v1359_v59 = vpop.f32.mrf.mxu0  ;;  %v1386_v38 = vadd.f32 %v1385_v55, %v847_v22 }
 0x17c   : > { %v1358_v2 = vadd.f32 %v1357_v36, %v1344_v53  ;;  %v3989_v36 = vor.u32 %v4662_v33, %v3986_v34  ;;  %v3816_v53 = vld [vmem:[%s5431_s29 + $0xa8] sm:$0xf]  ;;  %v4605_v34 = vld [vmem:[%s5431_s29 + $0x34] sm:$0xf0] }
 0x17d   : > { %v3752_v33 = vld [vmem:[%s5431_s29 + $0x28] sm:$0xf] }
 0x17e   : > { %v1372_v11 = vadd.f32 %v1371_v54, %v1358_v2  ;;  %2391 = vmatpush.bf16.msrb.mxu1 %v3989_v36  ;;  %v4621_v54 = vld [vmem:[%s5431_s29 + $0xb4] sm:$0xf0] }
 0x180   : > { %v1502_v24 = vmul.f32 0.1, %v1372_v11 }
 0x181   : > { %v1345_v9 = vpop.f32.mrf.mxu3 }
 0x182   : > { %v1346_v12 = vadd.f32 %v1345_v9, %v846_v44  ;;  %v1373_v13 = vpop.f32.mrf.mxu1  ;;  %v1387_v14 = vpop.f32.mrf.mxu2  ;;  %v1510_v37 = vmax.f32 %v1372_v11, %v1502_v24  ;;  %v4694_v44 = vld [vmem:[%s5431_s29 + $0x304] sm:$0xf]  ;;  %v4613_v11 = vld [vmem:[%s5431_s29 + $0x74] sm:$0xf0] }
 0x183   : > { %v4117_v43 = vor.u32 %v4694_v44, %v4114_v42  ;;  %v1388_v52 = vadd.f32 %v1387_v14, %v847_v22  ;;  %v3785_v20 = vor.u32 %v4613_v11, %v3784_v10  ;;  %v4609_v22 = vld [vmem:[%s5431_s29 + $0x54] sm:$0xf0]  ;;  %v4623_v10 = vld [vmem:[%s5431_s29 + $0xcc] sm:$0xf]  ;;  %v3834_v11 = vld [vmem:[%s5431_s29 + $0xd8] sm:$0xf0] }
 0x184   : > { %v1360_v18 = vadd.f32 %v1359_v59, %v1346_v12  ;;  %v1413_v19 = vpop.f32.mrf.mxu0  ;;  %v3817_v59 = vor.u32 %v4621_v54, %v3816_v53  ;;  %v4649_v44 = vld [vmem:[%s5431_s29 + $0x194] sm:$0xf0] }
 0x185   : > { %2405 = vmatpush.bf16.msrb.mxu2 %v4117_v43 }
 0x186   : > { %v1374_v25 = vadd.f32 %v1373_v13, %v1360_v18  ;;  %v3977_v13 = vor.u32 %v4661_v4, %v3976_v3  ;;  %v4657_v18 = vld [vmem:[%s5431_s29 + $0x1d4] sm:$0xf0]  ;;  %v4088_v4 = vld [vmem:[%s5431_s29 + $0x2c8] sm:$0xf] }
 0x187   : > { %v3961_v26 = vor.u32 %v4657_v18, %v3960_v17  ;;  %v4641_v17 = vld [vmem:[%s5431_s29 + $0x154] sm:$0xf0]  ;;  %v4216_v18 = vld [vmem:[%s5431_s29 + $0x3c8] sm:$0xf] }
 0x188   : > { %v1506_v32 = vmul.f32 0.1, %v1374_v25 }
 0x189   : > { %v1399_v35 = vpop.f32.mrf.mxu3 }
 0x18a   : > { %v1514_v39 = vmax.f32 %v1374_v25, %v1506_v32  ;;  %v1427_v40 = vpop.f32.mrf.mxu1  ;;  %v1441_v41 = vpop.f32.mrf.mxu2  ;;  %v1400_v47 = vadd.f32 %v1399_v35, %v1386_v38  ;;  %v3769_v32 = vor.u32 %v4609_v22, %v3768_v21  ;;  %v3945_v38 = vor.u32 %v4653_v29, %v3944_v28  ;;  %v4072_v21 = vld [vmem:[%s5431_s29 + $0x2a8] sm:$0xf]  ;;  %v4685_v22 = vld [vmem:[%s5431_s29 + $0x2b4] sm:$0xf0] }
 0x18b   : > { %v1428_v12 = vadd.f32 %v1427_v40, %v848_v1  ;;  %v4637_v28 = vld [vmem:[%s5431_s29 + $0x134] sm:$0xf0]  ;;  %v4200_v29 = vld [vmem:[%s5431_s29 + $0x3a8] sm:$0xf] }
 0x18c   : > { %v5806_v46 = vpack.c.bf16 %v1514_v39, %v1510_v37  ;;  %v1415_v48 = vpop.f32.mrf.mxu0  ;;  %v1414_v45 = vadd.f32 %v1413_v19, %v1400_v47  ;;  %v3753_v47 = vor.u32 %v4605_v34, %v3752_v33  ;;  %v4056_v34 = vld [vmem:[%s5431_s29 + $0x288] sm:$0xf] }
 0x18d   : > { %v1442_v23 = vadd.f32 %v1441_v41, %v1428_v12  ;;  %v3928_v41 = vld [vmem:[%s5431_s29 + $0x188] sm:$0xf] }
 0x18e   : > { %2308 = vmatmul.bf16.vlgmr.msrb.gmra.mxu3 %v5806_v46  ;;  %v1503_v60 = vmul.f32 0.1, %v1414_v45 }
 0x18f   : > { %2412 = vmatpush.bf16.msrb.mxu3 %v3849_v7 }
 0x190   : > { %v1511_v8 = vmax.f32 %v1414_v45, %v1503_v60  ;;  %v4627_v45 = vld [vmem:[%s5431_s29 + $0xec] sm:$0xf] }
 0x191   : > { %v1401_v55 = vpop.f32.mrf.mxu3 }
 0x192   : > { %v1402_v56 = vadd.f32 %v1401_v55, %v1388_v52  ;;  %v1429_v57 = vpop.f32.mrf.mxu1  ;;  %v1443_v58 = vpop.f32.mrf.mxu2  ;;  %v4693_v52 = vld [vmem:[%s5431_s29 + $0x2f4] sm:$0xf0] }
 0x193   : > { %2413 = vmatpush.bf16.msrb.mxu3 %v3833_v51  ;;  %v1430_v24 = vadd.f32 %v1429_v57, %v848_v1  ;;  %v4104_v51 = vld [vmem:[%s5431_s29 + $0x2e8] sm:$0xf]  ;;  %v3850_v57 = vld [vmem:[%s5431_s29 + $0xf8] sm:$0xf0]  ;;  %v4725_v1 = vld [vmem:[%s5431_s29 + $0x3f4] sm:$0xf0] }
 0x194   : > { %v1416_v61 = vadd.f32 %v1415_v48, %v1402_v56  ;;  %v1469_v62 = vpop.f32.mrf.mxu0  ;;  %v3736_v48 = vld [vmem:[%s5431_s29 + $0x8] sm:$0xf]  ;;  %v3929_v56 = vor.u32 %v4649_v44, %v3928_v41  ;;  %v3853_v3 = vor.u32 %v4627_v45, %v3850_v57  ;;  %v4633_v41 = vld [vmem:[%s5431_s29 + $0x114] sm:$0xf0] }
 0x195   : > { %v1470_v19 = vadd.f32 %v1469_v62, %v849_v5  ;;  %v1444_v35 = vadd.f32 %v1443_v58, %v1430_v24  ;;  %v3912_v58 = vld [vmem:[%s5431_s29 + $0x168] sm:$0xf]  ;;  %v3737_v63 = vor.u32 %v4601_v49, %v3736_v48  ;;  %v3818_v24 = vld [vmem:[%s5431_s29 + $0xb8] sm:$0xf0] }
 0x196   : > { %v1507_v2 = vmul.f32 0.1, %v1416_v61  ;;  %v4184_v44 = vld [vmem:[%s5431_s29 + $0x388] sm:$0xf]  ;;  %v3978_v48 = vld [vmem:[%s5431_s29 + $0x1f8] sm:$0xf0] }
 0x197   : > { %2414 = vmatpush.bf16.msrb.mxu3 %v3817_v59  ;;  %v4645_v59 = vld [vmem:[%s5431_s29 + $0x174] sm:$0xf0]  ;;  %v4040_v49 = vld [vmem:[%s5431_s29 + $0x268] sm:$0xf] }
 0x198   : > { %v1515_v9 = vmax.f32 %v1416_v61, %v1507_v2  ;;  %v4105_v2 = vor.u32 %v4693_v52, %v4104_v51  ;;  %v3913_v12 = vor.u32 %v4645_v59, %v3912_v58  ;;  %v4611_v51 = vld [vmem:[%s5431_s29 + $0x6c] sm:$0xf]  ;;  %v3786_v52 = vld [vmem:[%s5431_s29 + $0x78] sm:$0xf0] }
 0x199   : > { %v3789_v58 = vor.u32 %v4611_v51, %v3786_v52  ;;  %v4655_v59 = vld [vmem:[%s5431_s29 + $0x1cc] sm:$0xf]  ;;  %v4218_v51 = vld [vmem:[%s5431_s29 + $0x3d8] sm:$0xf0] }
 0x19a   : > { %v5821_v14 = vpack.c.bf16 %v1515_v9, %v1511_v8  ;;  %v1455_v15 = vpop.f32.mrf.mxu3  ;;  %v1483_v16 = vpop.f32.mrf.mxu1  ;;  %v4689_v9 = vld [vmem:[%s5431_s29 + $0x2d4] sm:$0xf0] }
 0x19b   : > { %2415 = vmatpush.bf16.msrb.mxu3 %v3801_v6  ;;  %v1484_v25 = vadd.f32 %v1483_v16, %v1470_v19  ;;  %v1456_v30 = vadd.f32 %v1455_v15, %v1442_v23  ;;  %v3896_v15 = vld [vmem:[%s5431_s29 + $0x148] sm:$0xf]  ;;  %v4721_v19 = vld [vmem:[%s5431_s29 + $0x3d4] sm:$0xf0]  ;;  %v4619_v23 = vld [vmem:[%s5431_s29 + $0xac] sm:$0xf] }
 0x19c   : > { %v1497_v31 = vpop.f32.mrf.mxu2  ;;  %2322 = vmatmul.bf16.vlgmr.msra.gmra.mxu0 %v5821_v14  ;;  %v1471_v27 = vpop.f32.mrf.mxu0  ;;  %v3821_v33 = vor.u32 %v4619_v23, %v3818_v24  ;;  %v3930_v23 = vld [vmem:[%s5431_s29 + $0x198] sm:$0xf0]  ;;  %v3992_v24 = vld [vmem:[%s5431_s29 + $0x208] sm:$0xf] }
 0x19d   : > { %2426 = vmatpush.bf16.msra.mxu0 %v3977_v13  ;;  %v1498_v36 = vadd.f32 %v1497_v31, %v1484_v25  ;;  %v1472_v37 = vadd.f32 %v1471_v27, %v849_v5  ;;  %v1504_v42 = vmul.f32 0.1, %v1456_v30  ;;  %v4233_v13 = vor.u32 %v4725_v1, %v4232_v0  ;;  %v3880_v27 = vld [vmem:[%s5431_s29 + $0x128] sm:$0xf]  ;;  %v3770_v0 = vld [vmem:[%s5431_s29 + $0x58] sm:$0xf0] }
 0x19e   : > { %2364 = vmatmul.bf16.vlgmr.msra.gmra.mxu3 %v5806_v46  ;;  %v4089_v31 = vor.u32 %v4689_v9, %v4088_v4  ;;  %v3897_v25 = vor.u32 %v4641_v17, %v3896_v15  ;;  %v4705_v4 = vld [vmem:[%s5431_s29 + $0x354] sm:$0xf0]  ;;  %v4651_v9 = vld [vmem:[%s5431_s29 + $0x1ac] sm:$0xf]  ;;  %v3754_v15 = vld [vmem:[%s5431_s29 + $0x38] sm:$0xf0] }
 0x19f   : > { %2416 = vmatpush.bf16.msrb.mxu3 %v3785_v20  ;;  %v1505_v53 = vmul.f32 0.1, %v1498_v36  ;;  %v1512_v60 = vmax.f32 %v1456_v30, %v1504_v42  ;;  %v3837_v20 = vor.u32 %v4623_v10, %v3834_v11  ;;  %v4717_v30 = vld [vmem:[%s5431_s29 + $0x3b4] sm:$0xf0]  ;;  %v3946_v10 = vld [vmem:[%s5431_s29 + $0x1b8] sm:$0xf0] }
 0x1a0   : > { %v4713_v42 = vld [vmem:[%s5431_s29 + $0x394] sm:$0xf0]  ;;  %v4008_v11 = vld [vmem:[%s5431_s29 + $0x228] sm:$0xf] }
 0x1a1   : > { %2427 = vmatpush.bf16.msra.mxu0 %v3961_v26  ;;  %v1513_v5 = vmax.f32 %v1498_v36, %v1505_v53  ;;  %v4217_v26 = vor.u32 %v4721_v19, %v4216_v18  ;;  %v4615_v36 = vld [vmem:[%s5431_s29 + $0x8c] sm:$0xf]  ;;  %v4185_v53 = vor.u32 %v4713_v42, %v4184_v44  ;;  %v3949_v18 = vor.u32 %v4651_v9, %v3946_v10  ;;  %v4136_v19 = vld [vmem:[%s5431_s29 + $0x328] sm:$0xf] }
 0x1a2   : > { %v1457_v39 = vpop.f32.mrf.mxu3  ;;  %v1485_v40 = vpop.f32.mrf.mxu1  ;;  %v4687_v42 = vld [vmem:[%s5431_s29 + $0x2cc] sm:$0xf] }
 0x1a3   : > { %v1458_v7 = vadd.f32 %v1457_v39, %v1444_v35  ;;  %v1486_v43 = vadd.f32 %v1485_v40, %v1472_v37  ;;  %2417 = vmatpush.bf16.msrb.mxu3 %v3769_v32  ;;  %v4073_v32 = vor.u32 %v4685_v22, %v4072_v21  ;;  %v4681_v35 = vld [vmem:[%s5431_s29 + $0x294] sm:$0xf0]  ;;  %v3802_v37 = vld [vmem:[%s5431_s29 + $0x98] sm:$0xf0]  ;;  %v4201_v39 = vor.u32 %v4717_v30, %v4200_v29  ;;  %v3864_v40 = vld [vmem:[%s5431_s29 + $0x108] sm:$0xf] }
 0x1a4   : > { %v1499_v50 = vpop.f32.mrf.mxu2  ;;  %v3865_v45 = vor.u32 %v4633_v41, %v3864_v40  ;;  %v4647_v22 = vld [vmem:[%s5431_s29 + $0x18c] sm:$0xf]  ;;  %v4106_v30 = vld [vmem:[%s5431_s29 + $0x2f8] sm:$0xf0] }
 0x1a5   : > { %v1508_v54 = vmul.f32 0.1, %v1458_v7  ;;  %v1500_v55 = vadd.f32 %v1499_v50, %v1486_v43  ;;  %2428 = vmatpush.bf16.msra.mxu0 %v3945_v38  ;;  %v3881_v38 = vor.u32 %v4637_v28, %v3880_v27  ;;  %v3805_v43 = vor.u32 %v4615_v36, %v3802_v37  ;;  %v4677_v50 = vld [vmem:[%s5431_s29 + $0x274] sm:$0xf0]  ;;  %v3738_v27 = vld [vmem:[%s5431_s29 + $0x18] sm:$0xf0] }
 0x1a6   : > { %v4041_v57 = vor.u32 %v4677_v50, %v4040_v49  ;;  %v4691_v29 = vld [vmem:[%s5431_s29 + $0x2ec] sm:$0xf]  ;;  %v4234_v40 = vld [vmem:[%s5431_s29 + $0x3f8] sm:$0xf0] }
 0x1a7   : > { %v1516_v61 = vmax.f32 %v1458_v7, %v1508_v54  ;;  %v1509_v62 = vmul.f32 0.1, %v1500_v55  ;;  %2418 = vmatpush.bf16.msrb.mxu3 %v3753_v47  ;;  %v4057_v7 = vor.u32 %v4681_v35, %v4056_v34  ;;  %v4659_v47 = vld [vmem:[%s5431_s29 + $0x1ec] sm:$0xf]  ;;  %v4697_v34 = vld [vmem:[%s5431_s29 + $0x314] sm:$0xf0]  ;;  %v4109_v41 = vor.u32 %v4691_v29, %v4106_v30 }
 0x1a8   : > { %v3981_v54 = vor.u32 %v4659_v47, %v3978_v48  ;;  %v4643_v35 = vld [vmem:[%s5431_s29 + $0x16c] sm:$0xf]  ;;  %v3898_v49 = vld [vmem:[%s5431_s29 + $0x158] sm:$0xf0] }
 0x1a9   : > { %v5846_v6 = vpack.c.bf16 %v1516_v61, %v1512_v60  ;;  %v1517_v8 = vmax.f32 %v1500_v55, %v1509_v62  ;;  %2429 = vmatpush.bf16.msra.mxu0 %v3929_v56  ;;  %v4168_v55 = vld [vmem:[%s5431_s29 + $0x368] sm:$0xf]  ;;  %v4709_v56 = vld [vmem:[%s5431_s29 + $0x374] sm:$0xf0]  ;;  %v3962_v60 = vld [vmem:[%s5431_s29 + $0x1d8] sm:$0xf0] }
 0x1aa   : > { %v4024_v61 = vld [vmem:[%s5431_s29 + $0x248] sm:$0xf]  ;;  %v4673_v62 = vld [vmem:[%s5431_s29 + $0x254] sm:$0xf0]  ;;  %v4169_v1 = vor.u32 %v4709_v56, %v4168_v55  ;;  %v4639_v48 = vld [vmem:[%s5431_s29 + $0x14c] sm:$0xf] }
 0x1ab   : > { %v5852_v16 = vpack.c.bf16 %v1517_v8, %v1513_v5  ;;  %2336 = vmatmul.bf16.vlgmr.msra.gmra.mxu1 %v5846_v6  ;;  %2419 = vmatpush.bf16.msrb.mxu3 %v3737_v63  ;;  %v4607_v63 = vld [vmem:[%s5431_s29 + $0x4c] sm:$0xf]  ;;  %v4025_v5 = vor.u32 %v4673_v62, %v4024_v61  ;;  %v4058_v62 = vld [vmem:[%s5431_s29 + $0x298] sm:$0xf0] }
 0x1ac   : > { %2440 = vmatpush.bf16.msra.mxu1 %v4105_v2  ;;  %2378 = vmatmul.bf16.vlgmr.msrb.gmra.mxu0 %v5821_v14  ;;  %v3965_v2 = vor.u32 %v4655_v59, %v3962_v60  ;;  %v3773_v8 = vor.u32 %v4607_v63, %v3770_v0  ;;  %v4719_v50 = vld [vmem:[%s5431_s29 + $0x3cc] sm:$0xf]  ;;  %v4202_v59 = vld [vmem:[%s5431_s29 + $0x3b8] sm:$0xf0] }
 0x1ad   : > { %2350 = vmatmul.bf16.vlgmr.msra.gmra.mxu2 %v5852_v16  ;;  %2430 = vmatpush.bf16.msra.mxu0 %v3913_v12  ;;  %v4669_v12 = vld [vmem:[%s5431_s29 + $0x234] sm:$0xf0]  ;;  %v4221_v55 = vor.u32 %v4719_v50, %v4218_v51  ;;  %v4635_v56 = vld [vmem:[%s5431_s29 + $0x12c] sm:$0xf]  ;;  %v4256_v51 = vld [vmem:[%s5440_s5 + $0x20] sm:$0xf] }
 0x1ae   : > { %2454 = vmatpush.bf16.msra.mxu2 %v4233_v13  ;;  %2420 = vmatmul.bf16.vlgmr.msrb.gmra.mxu3 %v5806_v46  ;;  %v4603_v13 = vld [vmem:[%s5431_s29 + $0x2c] sm:$0xf] }
 0x1af   : > { %2468 = vmatpush.bf16.msra.mxu3 %v3853_v3  ;;  %v4152_v3 = vld [vmem:[%s5431_s29 + $0x348] sm:$0xf]  ;;  %v3757_v21 = vor.u32 %v4603_v13, %v3754_v15  ;;  %v4679_v61 = vld [vmem:[%s5431_s29 + $0x28c] sm:$0xf] }
 0x1b0   : > { %2441 = vmatpush.bf16.msra.mxu1 %v4089_v31  ;;  %v4153_v17 = vor.u32 %v4705_v4, %v4152_v3  ;;  %v4701_v31 = vld [vmem:[%s5431_s29 + $0x334] sm:$0xf0]  ;;  %v4186_v3 = vld [vmem:[%s5431_s29 + $0x398] sm:$0xf0]  ;;  %v4061_v4 = vor.u32 %v4679_v61, %v4058_v62  ;;  %v4671_v15 = vld [vmem:[%s5431_s29 + $0x24c] sm:$0xf] }
 0x1b1   : > { %2431 = vmatpush.bf16.msra.mxu0 %v3897_v25  ;;  %v4665_v25 = vld [vmem:[%s5431_s29 + $0x214] sm:$0xf0]  ;;  %v4137_v28 = vor.u32 %v4701_v31, %v4136_v19  ;;  %v4703_v19 = vld [vmem:[%s5431_s29 + $0x34c] sm:$0xf]  ;;  %v4154_v31 = vld [vmem:[%s5431_s29 + $0x358] sm:$0xf0] }
 0x1b2   : > { %2455 = vmatpush.bf16.msra.mxu2 %v4217_v26  ;;  %v4599_v26 = vld [vmem:[%s5431_s29 + $0xc] sm:$0xf]  ;;  %v3993_v36 = vor.u32 %v4665_v25, %v3992_v24  ;;  %v4138_v25 = vld [vmem:[%s5431_s29 + $0x338] sm:$0xf0]  ;;  %v4240_v62 = vld [vmem:[%s5440_s5] sm:$0xf] }
 0x1b3   : > { %2469 = vmatpush.bf16.msra.mxu3 %v3837_v20  ;;  %v4009_v20 = vor.u32 %v4669_v12, %v4008_v11  ;;  %v3741_v37 = vor.u32 %v4599_v26, %v3738_v27  ;;  %v4707_v11 = vld [vmem:[%s5431_s29 + $0x36c] sm:$0xf]  ;;  %v4170_v12 = vld [vmem:[%s5431_s29 + $0x378] sm:$0xf0] }
 0x1b4   : > { %2442 = vmatpush.bf16.msra.mxu1 %v4073_v32  ;;  %v3933_v32 = vor.u32 %v4647_v22, %v3930_v23  ;;  %v4010_v22 = vld [vmem:[%s5431_s29 + $0x238] sm:$0xf0]  ;;  %v4157_v23 = vor.u32 %v4703_v19, %v4154_v31  ;;  %v4699_v24 = vld [vmem:[%s5431_s29 + $0x32c] sm:$0xf]  ;;  %v4320_v19 = vld [vmem:[%s5440_s5 + $0xa0] sm:$0xf] }
 0x1b5   : > { %2432 = vmatpush.bf16.msra.mxu0 %v3881_v38  ;;  %v3914_v38 = vld [vmem:[%s5431_s29 + $0x178] sm:$0xf0]  ;;  %v4663_v27 = vld [vmem:[%s5431_s29 + $0x20c] sm:$0xf]  ;;  %v4141_v29 = vor.u32 %v4699_v24, %v4138_v25  ;;  %v4747_v31 = vld [vmem:[%s5440_s5 + $0xa4] sm:$0xf0] }
 0x1b6   : > { %2456 = vmatpush.bf16.msra.mxu2 %v4201_v39  ;;  %v4723_v39 = vld [vmem:[%s5431_s29 + $0x3ec] sm:$0xf]  ;;  %v4282_v24 = vld [vmem:[%s5440_s5 + $0x58] sm:$0xf0] }
 0x1b7   : > { %2470 = vmatpush.bf16.msra.mxu3 %v3821_v33  ;;  %v4120_v33 = vld [vmem:[%s5431_s29 + $0x308] sm:$0xf]  ;;  %v4237_v47 = vor.u32 %v4723_v39, %v4234_v40  ;;  %v4695_v30 = vld [vmem:[%s5431_s29 + $0x30c] sm:$0xf]  ;;  %v4280_v40 = vld [vmem:[%s5440_s5 + $0x50] sm:$0xf] }
 0x1b8   : > { %2443 = vmatpush.bf16.msra.mxu1 %v4057_v7  ;;  %v4121_v44 = vor.u32 %v4697_v34, %v4120_v33  ;;  %v4090_v7 = vld [vmem:[%s5431_s29 + $0x2d8] sm:$0xf0]  ;;  %v4296_v34 = vld [vmem:[%s5440_s5 + $0x70] sm:$0xf] }
 0x1b9   : > { %2433 = vmatpush.bf16.msra.mxu0 %v3865_v45  ;;  %v4093_v52 = vor.u32 %v4687_v42, %v4090_v7  ;;  %v4683_v45 = vld [vmem:[%s5431_s29 + $0x2ac] sm:$0xf]  ;;  %v4264_v7 = vld [vmem:[%s5440_s5 + $0x30] sm:$0xf] }
 0x1ba   : > { %2457 = vmatpush.bf16.msra.mxu2 %v4185_v53  ;;  %v4074_v53 = vld [vmem:[%s5431_s29 + $0x2b8] sm:$0xf0] }
 0x1bb   : > { %2471 = vmatpush.bf16.msra.mxu3 %v3805_v43  ;;  %2392 = vmatmul.bf16.vlgmr.msrb.gmra.mxu1 %v5846_v6  ;;  %v3917_v43 = vor.u32 %v4643_v35, %v3914_v38  ;;  %v4077_v60 = vor.u32 %v4683_v45, %v4074_v53  ;;  %v4741_v35 = vld [vmem:[%s5440_s5 + $0x74] sm:$0xf0]  ;;  %v4739_v38 = vld [vmem:[%s5440_s5 + $0x64] sm:$0xf0]  ;;  %v4352_v45 = vld [vmem:[%s5440_s5 + $0xe0] sm:$0xf] }
 0x1bc   : > { %2444 = vmatpush.bf16.msra.mxu1 %v4041_v57  ;;  %2434 = vmatmul.bf16.vlgmr.msra.gmra.mxu0 %v5821_v14  ;;  %v3882_v57 = vld [vmem:[%s5431_s29 + $0x138] sm:$0xf0] }
 0x1bd   : > { %2482 = vmatpush.bf16.msrb.mxu0 %v3981_v54  ;;  %2406 = vmatmul.bf16.vlgmr.msrb.gmra.mxu2 %v5852_v16  ;;  %v3901_v54 = vor.u32 %v4639_v48, %v3898_v49  ;;  %v3885_v63 = vor.u32 %v4635_v56, %v3882_v57  ;;  %v4360_v48 = vld [vmem:[%s5440_s5 + $0xf0] sm:$0xf]  ;;  %v4757_v49 = vld [vmem:[%s5440_s5 + $0xf4] sm:$0xf0] }
 0x1be   : > { %2458 = vmatpush.bf16.msra.mxu2 %v4169_v1  ;;  %v4631_v1 = vld [vmem:[%s5431_s29 + $0x10c] sm:$0xf]  ;;  %v4361_v50 = vor.u32 %v4757_v49, %v4360_v48  ;;  %v4248_v56 = vld [vmem:[%s5440_s5 + $0x10] sm:$0xf]  ;;  %v4729_v57 = vld [vmem:[%s5440_s5 + $0x14] sm:$0xf0] }
 0x1bf   : > { %2472 = vmatpush.bf16.msra.mxu3 %v3789_v58  ;;  %v4715_v58 = vld [vmem:[%s5431_s29 + $0x3ac] sm:$0xf]  ;;  %v4392_v49 = vld [vmem:[%s5440_s5 + $0x130] sm:$0xf] }
 0x1c0   : > { %2445 = vmatpush.bf16.msra.mxu1 %v4025_v5  ;;  %v4205_v0 = vor.u32 %v4715_v58, %v4202_v59  ;;  %v4675_v5 = vld [vmem:[%s5431_s29 + $0x26c] sm:$0xf]  ;;  %v4344_v58 = vld [vmem:[%s5440_s5 + $0xd0] sm:$0xf]  ;;  %v4249_v59 = vor.u32 %v4729_v57, %v4248_v56  ;;  %v6019_v57 = vld [vmem:[%s5438_s3] sm:$0xf]  ;;  %s3065_s3 = scalar_lea.hbm %s6191_s15, %s4790_s27 }
 0x1c1   : > { %2483 = vmatpush.bf16.msrb.mxu0 %v3965_v2  ;;  %v4711_v2 = vld [vmem:[%s5431_s29 + $0x38c] sm:$0xf]  ;;  %s3068_s20 = sshll.u32 %s3065_s3, 4  ;;  %s3069_s20 = int_to_ptr.hbm [resolvable:$true] %s3068_s20 }
 0x1c2   : > { %2459 = vmatpush.bf16.msra.mxu2 %v4153_v17  ;;  %v4189_v10 = vor.u32 %v4711_v2, %v4186_v3  ;;  %v4026_v17 = vld [vmem:[%s5431_s29 + $0x258] sm:$0xf0]  ;;  %v4298_v3 = vld [vmem:[%s5440_s5 + $0x78] sm:$0xf0]  ;;  %s5120_s14 = sshra.s32 %s3069_s20, 4  ;;  %s5121_s14 = int_to_ptr.hbm [resolvable:$true] %s5120_s14 }
 0x1c3   : > { %2473 = vmatpush.bf16.msra.mxu3 %v3773_v8  ;;  %v4042_v8 = vld [vmem:[%s5431_s29 + $0x278] sm:$0xf0]  ;;  %s5122_s19 = scalar_lea.hbm %s5121_s14, 32  ;;  %p5127_p7 = scmp.lt.s32.totalorder %s5121_s14, %s6191_s15 }
 0x1c4   : > { %2446 = vmatpush.bf16.msra.mxu1 %v4009_v20  ;;  %v4045_v13 = vor.u32 %v4675_v5, %v4042_v8  ;;  %v4029_v20 = vor.u32 %v4671_v15, %v4026_v17  ;;  %v4740_v2 = vld [vmem:[%s5440_s5 + $0x74] sm:$0xf]  ;;  %v4328_v8 = vld [vmem:[%s5440_s5 + $0xb0] sm:$0xf]  ;;  %v4290_v15 = vld [vmem:[%s5440_s5 + $0x68] sm:$0xf0]  ;;  %p5123_p4 = scmp.ne.s32.totalorder %s5121_s14, %s5122_s19  ;;  %p5128_p8 = scmp.lt.s32.totalorder %s5126_s25, %s5122_s19 }
 0x1c5   : > { %2484 = vmatpush.bf16.msrb.mxu0 %v3949_v18  ;;  %v4173_v18 = vor.u32 %v4707_v11, %v4170_v12  ;;  %v4301_v5 = vor.u32 %v4740_v2, %v4298_v3  ;;  %v4773_v12 = vld [vmem:[%s5440_s5 + $0x174] sm:$0xf0]  ;;  %v4346_v2 = vld [vmem:[%s5440_s5 + $0xd8] sm:$0xf0] }
 0x1c6   : > { %2460 = vmatpush.bf16.msra.mxu2 %v4137_v28  ;;  %v3994_v28 = vld [vmem:[%s5431_s29 + $0x218] sm:$0xf0]  ;;  %p5124_p5 = pnand %p5123_p4, %p5313_p9  ;;  %p5129_p10 = por %p5128_p8, %p5127_p7 }
 0x1c7   : > { %2474 = vmatpush.bf16.msra.mxu3 %v3757_v21  ;;  %v4667_v21 = vld [vmem:[%s5431_s29 + $0x22c] sm:$0xf] }
 0x1c8   : > { %2447 = vmatpush.bf16.msra.mxu1 %v3993_v36  ;;  %v4013_v26 = vor.u32 %v4667_v21, %v4010_v22  ;;  %v4288_v36 = vld [vmem:[%s5440_s5 + $0x60] sm:$0xf]  ;;  %v4321_v21 = vor.u32 %v4747_v31, %v4320_v19  ;;  %v4771_v22 = vld [vmem:[%s5440_s5 + $0x164] sm:$0xf0]  ;;  %p5125_p6 = pneg %p5124_p5 }
 0x1c9   : > { %2485 = vmatpush.bf16.msrb.mxu0 %v3933_v32  ;;  %v4122_v32 = vld [vmem:[%s5431_s29 + $0x318] sm:$0xf0]  ;;  %v4289_v39 = vor.u32 %v4739_v38, %v4288_v36  ;;  %v4743_v38 = vld [vmem:[%s5440_s5 + $0x84] sm:$0xf0]  ;;  %v4368_v31 = vld [vmem:[%s5440_s5 + $0x100] sm:$0xf] }
 0x1ca   : > { %2461 = vmatpush.bf16.msra.mxu2 %v4121_v44  ;;  %v4125_v33 = vor.u32 %v4695_v30, %v4122_v32  ;;  %v4272_v44 = vld [vmem:[%s5440_s5 + $0x40] sm:$0xf]  ;;  %v4769_v32 = vld [vmem:[%s5440_s5 + $0x154] sm:$0xf0]  ;;  %p5130_p12 = pnand %p5129_p10, %p5125_p6 }
 0x1cb   : > { %2475 = vmatpush.bf16.msra.mxu3 %v3741_v37  ;;  %2448 = vmatmul.bf16.vlgmr.msra.gmra.mxu1 %v5846_v6  ;;  %v4297_v37 = vor.u32 %v4741_v35, %v4296_v34 }
 0x1cc   : > { %2496 = vmatpush.bf16.msrb.mxu1 %v4109_v41  ;;  %v4737_v41 = vld [vmem:[%s5440_s5 + $0x54] sm:$0xf0] }
 0x1cd   : > { %2486 = vmatpush.bf16.msrb.mxu0 %v3917_v43  ;;  %2462 = vmatmul.bf16.vlgmr.msra.gmra.mxu2 %v5852_v16  ;;  %v4733_v43 = vld [vmem:[%s5440_s5 + $0x34] sm:$0xf0] }
 0x1ce   : > { %2510 = vmatpush.bf16.msrb.mxu2 %v4237_v47  ;;  %2476 = vmatmul.bf16.vlgmr.msra.gmra.mxu3 %v5806_v46  ;;  %v3866_v46 = vld [vmem:[%s5431_s29 + $0x118] sm:$0xf0]  ;;  %v4265_v47 = vor.u32 %v4733_v43, %v4264_v7 }
 0x1cf   : > { %v3869_v9 = vor.u32 %v4631_v1, %v3866_v46  ;;  %2934 = vmatpush.bf16.msrb.mxu3 %v4297_v37  ;;  %v4751_v46 = vld [vmem:[%s5440_s5 + $0xc4] sm:$0xf0]  ;;  %v4304_v37 = vld [vmem:[%s5440_s5 + $0x80] sm:$0xf]  ;;  %v4756_v43 = vld [vmem:[%s5440_s5 + $0xf4] sm:$0xf] }
 0x1d0   : > { %2497 = vmatpush.bf16.msrb.mxu1 %v4093_v52  ;;  %v4731_v52 = vld [vmem:[%s5440_s5 + $0x24] sm:$0xf0] }
 0x1d1   : > { %2487 = vmatpush.bf16.msrb.mxu0 %v3901_v54  ;;  %v4257_v53 = vor.u32 %v4731_v52, %v4256_v51  ;;  %v4755_v54 = vld [vmem:[%s5440_s5 + $0xe4] sm:$0xf0]  ;;  %v4730_v52 = vld [vmem:[%s5440_s5 + $0x24] sm:$0xf] }
 0x1d2   : > { %2511 = vmatpush.bf16.msrb.mxu2 %v4221_v55  ;;  %v4353_v55 = vor.u32 %v4755_v54, %v4352_v45  ;;  %v4258_v45 = vld [vmem:[%s5440_s5 + $0x28] sm:$0xf0] }
 0x1d3   : > { %2935 = vmatpush.bf16.msrb.mxu3 %v4289_v39  ;;  %v4400_v39 = vld [vmem:[%s5440_s5 + $0x140] sm:$0xf]  ;;  %v4261_v54 = vor.u32 %v4730_v52, %v4258_v45 }
 0x1d4   : > { %2498 = vmatpush.bf16.msrb.mxu1 %v4077_v60  ;;  %v4753_v60 = vld [vmem:[%s5440_s5 + $0xd4] sm:$0xf0] }
 0x1d5   : > { %2488 = vmatpush.bf16.msrb.mxu0 %v3885_v63  ;;  %v4345_v61 = vor.u32 %v4753_v60, %v4344_v58  ;;  %v4727_v63 = vld [vmem:[%s5440_s5 + $0x4] sm:$0xf0]  ;;  %v4384_v58 = vld [vmem:[%s5440_s5 + $0x120] sm:$0xf] }
 0x1d6   : > { %2512 = vmatpush.bf16.msrb.mxu2 %v4205_v0  ;;  %v4336_v0 = vld [vmem:[%s5440_s5 + $0xc0] sm:$0xf]  ;;  %v4241_v1 = vor.u32 %v4727_v63, %v4240_v62  ;;  %v4728_v63 = vld [vmem:[%s5440_s5 + $0x14] sm:$0xf] }
 0x1d8   : > { %2499 = vmatpush.bf16.msrb.mxu1 %v4061_v4  ;;  %v4337_v4 = vor.u32 %v4751_v46, %v4336_v0  ;;  %v4250_v0 = vld [vmem:[%s5440_s5 + $0x18] sm:$0xf0] }
 0x1d9   : > { %2489 = vmatpush.bf16.msrb.mxu0 %v3869_v9  ;;  %v4749_v9 = vld [vmem:[%s5440_s5 + $0xb4] sm:$0xf0]  ;;  %v4253_v46 = vor.u32 %v4728_v63, %v4250_v0  ;;  %v4464_v0 = vld [vmem:[%s5440_s5 + $0x1c0] sm:$0xf] }
 0x1da   : > { %2513 = vmatpush.bf16.msrb.mxu2 %v4189_v10  ;;  %v4424_v10 = vld [vmem:[%s5440_s5 + $0x170] sm:$0xf]  ;;  %v4329_v11 = vor.u32 %v4749_v9, %v4328_v8  ;;  %v4761_v9 = vld [vmem:[%s5440_s5 + $0x114] sm:$0xf0] }
 0x1db   : > { %v4425_v17 = vor.u32 %v4773_v12, %v4424_v10  ;;  %v4376_v8 = vld [vmem:[%s5440_s5 + $0x110] sm:$0xf]  ;;  %v4242_v12 = vld [vmem:[%s5440_s5 + $0x8] sm:$0xf0] }
 0x1dc   : > { %2500 = vmatpush.bf16.msrb.mxu1 %v4045_v13  ;;  %2490 = vmatmul.bf16.vlgmr.msrb.gmra.mxu0 %v5821_v14  ;;  %v3997_v14 = vor.u32 %v4663_v27, %v3994_v28  ;;  %v4738_v13 = vld [vmem:[%s5440_s5 + $0x64] sm:$0xf]  ;;  %v4312_v27 = vld [vmem:[%s5440_s5 + $0x90] sm:$0xf]  ;;  %v4745_v28 = vld [vmem:[%s5440_s5 + $0x94] sm:$0xf0]  ;;  %v4377_v10 = vor.u32 %v4761_v9, %v4376_v8 }
 0x1dd   : > { %2948 = vmatpush.bf16.msra.mxu0 %v4361_v50  ;;  %v4313_v30 = vor.u32 %v4745_v28, %v4312_v27  ;;  %v4765_v50 = vld [vmem:[%s5440_s5 + $0x134] sm:$0xf0]  ;;  %v4330_v27 = vld [vmem:[%s5440_s5 + $0xb8] sm:$0xf0] }
 0x1de   : > { %2514 = vmatpush.bf16.msrb.mxu2 %v4173_v18  ;;  %v4293_v18 = vor.u32 %v4738_v13, %v4290_v15  ;;  %v4393_v51 = vor.u32 %v4765_v50, %v4392_v49  ;;  %v4750_v13 = vld [vmem:[%s5440_s5 + $0xc4] sm:$0xf]  ;;  %v4472_v49 = vld [vmem:[%s5440_s5 + $0x1d0] sm:$0xf]  ;;  %v4785_v50 = vld [vmem:[%s5440_s5 + $0x1d4] sm:$0xf0] }
 0x1df   : > { %v4473_v45 = vor.u32 %v4785_v50, %v4472_v49  ;;  %v4432_v50 = vld [vmem:[%s5440_s5 + $0x180] sm:$0xf] }
 0x1e0   : > { %2501 = vmatpush.bf16.msrb.mxu1 %v4029_v20  ;;  %v4416_v20 = vld [vmem:[%s5440_s5 + $0x160] sm:$0xf] }
 0x1e1   : > { %2949 = vmatpush.bf16.msra.mxu0 %v4353_v55  ;;  %v4417_v25 = vor.u32 %v4771_v22, %v4416_v20  ;;  %v4354_v55 = vld [vmem:[%s5440_s5 + $0xe8] sm:$0xf0]  ;;  %v4759_v20 = vld [vmem:[%s5440_s5 + $0x104] sm:$0xf0] }
 0x1e2   : > { %2515 = vmatpush.bf16.msrb.mxu2 %v4157_v23  ;;  %v4736_v23 = vld [vmem:[%s5440_s5 + $0x54] sm:$0xf] }
 0x1e4   : > { %2502 = vmatpush.bf16.msrb.mxu1 %v4013_v26  ;;  %v4285_v26 = vor.u32 %v4736_v23, %v4282_v24  ;;  %v4369_v24 = vor.u32 %v4759_v20, %v4368_v31 }
 0x1e5   : > { %2950 = vmatpush.bf16.msra.mxu0 %v4345_v61 }
 0x1e6   : > { %2516 = vmatpush.bf16.msrb.mxu2 %v4141_v29  ;;  %v4408_v29 = vld [vmem:[%s5440_s5 + $0x150] sm:$0xf] }
 0x1e7   : > { %v4409_v34 = vor.u32 %v4769_v32, %v4408_v29  ;;  %v4772_v32 = vld [vmem:[%s5440_s5 + $0x174] sm:$0xf] }
 0x1e8   : > { %2503 = vmatpush.bf16.msrb.mxu1 %v3997_v14  ;;  %v4734_v14 = vld [vmem:[%s5440_s5 + $0x44] sm:$0xf] }
 0x1e9   : > { %2951 = vmatpush.bf16.msra.mxu0 %v4337_v4 }
 0x1ea   : > { %2517 = vmatpush.bf16.msrb.mxu2 %v4125_v33  ;;  %v4274_v33 = vld [vmem:[%s5440_s5 + $0x48] sm:$0xf0] }
 0x1eb   : > { %2504 = vmatmul.bf16.vlgmr.msrb.gmra.mxu1 %v5846_v6  ;;  %v4281_v6 = vor.u32 %v4737_v41, %v4280_v40  ;;  %v4277_v35 = vor.u32 %v4734_v14, %v4274_v33  ;;  %v4305_v41 = vor.u32 %v4743_v38, %v4304_v37  ;;  %v4426_v14 = vld [vmem:[%s5440_s5 + $0x178] sm:$0xf0]  ;;  %v4480_v37 = vld [vmem:[%s5440_s5 + $0x1e0] sm:$0xf]  ;;  %v4787_v38 = vld [vmem:[%s5440_s5 + $0x1e4] sm:$0xf0] }
 0x1ec   : > { %2962 = vmatpush.bf16.msra.mxu1 %v4425_v17  ;;  %v4338_v17 = vld [vmem:[%s5440_s5 + $0xc8] sm:$0xf0] }
 0x1ed   : > { %2518 = vmatmul.bf16.vlgmr.msrb.gmra.mxu2 %v5852_v16  ;;  %v4735_v16 = vld [vmem:[%s5440_s5 + $0x44] sm:$0xf0]  ;;  %2936 = vmatpush.bf16.msrb.mxu3 %v4281_v6  ;;  %v4732_v6 = vld [vmem:[%s5440_s5 + $0x34] sm:$0xf] }
 0x1ee   : > { %v4273_v42 = vor.u32 %v4735_v16, %v4272_v44  ;;  %2952 = vmatpush.bf16.msra.mxu0 %v4329_v11  ;;  %v4767_v44 = vld [vmem:[%s5440_s5 + $0x144] sm:$0xf0]  ;;  %v4266_v16 = vld [vmem:[%s5440_s5 + $0x38] sm:$0xf0]  ;;  %v4726_v11 = vld [vmem:[%s5440_s5 + $0x4] sm:$0xf] }
 0x1ef   : > { %v4269_v7 = vor.u32 %v4732_v6, %v4266_v16  ;;  %v4245_v15 = vor.u32 %v4726_v11, %v4242_v12  ;;  %v4770_v6 = vld [vmem:[%s5440_s5 + $0x164] sm:$0xf]  ;;  %v4402_v11 = vld [vmem:[%s5440_s5 + $0x148] sm:$0xf0] }
 0x1f0   : > { %2963 = vmatpush.bf16.msra.mxu1 %v4417_v25  ;;  %v4789_v25 = vld [vmem:[%s5440_s5 + $0x1f4] sm:$0xf0] }
 0x1f1   : > { %2937 = vmatpush.bf16.msrb.mxu3 %v4273_v42  ;;  %v4401_v42 = vor.u32 %v4767_v44, %v4400_v39  ;;  %v4322_v44 = vld [vmem:[%s5440_s5 + $0xa8] sm:$0xf0] }
 0x1f2   : > { %2953 = vmatpush.bf16.msra.mxu0 %v4321_v21  ;;  %v4488_v21 = vld [vmem:[%s5440_s5 + $0x1f0] sm:$0xf] }
 0x1f3   : > { %v4489_v29 = vor.u32 %v4789_v25, %v4488_v21 }
 0x1f4   : > { %2964 = vmatpush.bf16.msra.mxu1 %v4409_v34  ;;  %v4429_v34 = vor.u32 %v4772_v32, %v4426_v14  ;;  %v4762_v32 = vld [vmem:[%s5440_s5 + $0x124] sm:$0xf]  ;;  %v4386_v14 = vld [vmem:[%s5440_s5 + $0x128] sm:$0xf0] }
 0x1f5   : > { %2938 = vmatpush.bf16.msrb.mxu3 %v4265_v47  ;;  %v4362_v47 = vld [vmem:[%s5440_s5 + $0xf8] sm:$0xf0]  ;;  %2976 = vmatpush.bf16.msra.mxu2 %v4489_v29  ;;  %v4779_v29 = vld [vmem:[%s5440_s5 + $0x1a4] sm:$0xf0] }
 0x1f6   : > { %2954 = vmatpush.bf16.msra.mxu0 %v4313_v30  ;;  %v4365_v48 = vor.u32 %v4756_v43, %v4362_v47  ;;  %v4418_v43 = vld [vmem:[%s5440_s5 + $0x168] sm:$0xf0] }
 0x1f7   : > { %v4421_v47 = vor.u32 %v4770_v6, %v4418_v43 }
 0x1f8   : > { %2965 = vmatpush.bf16.msra.mxu1 %v4401_v42 }
 0x1f9   : > { %2939 = vmatpush.bf16.msrb.mxu3 %v4257_v53  ;;  %v4754_v53 = vld [vmem:[%s5440_s5 + $0xe4] sm:$0xf] }
 0x1fa   : > { %2955 = vmatpush.bf16.msra.mxu0 %v4305_v41  ;;  %v4357_v56 = vor.u32 %v4754_v53, %v4354_v55  ;;  %v4746_v41 = vld [vmem:[%s5440_s5 + $0xa4] sm:$0xf]  ;;  %v4744_v53 = vld [vmem:[%s5440_s5 + $0x94] sm:$0xf] }
 0x1fb   : > { %v4768_v55 = vld [vmem:[%s5440_s5 + $0x154] sm:$0xf] }
 0x1fc   : > { %2966 = vmatpush.bf16.msra.mxu1 %v4393_v51 }
 0x1fd   : > { %2940 = vmatpush.bf16.msrb.mxu3 %v4249_v59  ;;  %v4763_v59 = vld [vmem:[%s5440_s5 + $0x124] sm:$0xf0] }
 0x1fe   : > { %3004 = vmatpush.bf16.msrb.mxu0 %v4365_v48  ;;  %v4385_v62 = vor.u32 %v4763_v59, %v4384_v58 }
 0x200   : > { %2967 = vmatpush.bf16.msra.mxu1 %v4385_v62 }
 0x201   : > { %2941 = vmatpush.bf16.msrb.mxu3 %v4241_v1  ;;  %v4752_v1 = vld [vmem:[%s5440_s5 + $0xd4] sm:$0xf] }
 0x202   : > { %3005 = vmatpush.bf16.msrb.mxu0 %v4357_v56  ;;  %v4349_v4 = vor.u32 %v4752_v1, %v4346_v2  ;;  %v4783_v1 = vld [vmem:[%s5440_s5 + $0x1c4] sm:$0xf0] }
 0x203   : > { %v4465_v2 = vor.u32 %v4783_v1, %v4464_v0  ;;  %v4786_v1 = vld [vmem:[%s5440_s5 + $0x1e4] sm:$0xf] }
 0x204   : > { %2968 = vmatpush.bf16.msra.mxu1 %v4377_v10 }
 0x205   : > { %2990 = vmatpush.bf16.msra.mxu3 %v4301_v5  ;;  %v1652_v5 = vperm.slane %v6019_v57, 0 }
 0x206   : > { %3006 = vmatpush.bf16.msrb.mxu0 %v4349_v4  ;;  %v4306_v4 = vld [vmem:[%s5440_s5 + $0x88] sm:$0xf0] }
 0x208   : > { %2969 = vmatpush.bf16.msra.mxu1 %v4369_v24 }
 0x209   : > { %2991 = vmatpush.bf16.msra.mxu3 %v4293_v18  ;;  %v4341_v18 = vor.u32 %v4750_v13, %v4338_v17 }
 0x20b   : > { %3007 = vmatpush.bf16.msrb.mxu0 %v4341_v18  ;;  %v4456_v18 = vld [vmem:[%s5440_s5 + $0x1b0] sm:$0xf] }
 0x20c   : > { %3018 = vmatpush.bf16.msrb.mxu1 %v4429_v34 }
 0x20d   : > { %2992 = vmatpush.bf16.msra.mxu3 %v4285_v26  ;;  %v4748_v26 = vld [vmem:[%s5440_s5 + $0xb4] sm:$0xf] }
 0x20e   : > { %v4333_v30 = vor.u32 %v4748_v26, %v4330_v27 }
 0x210   : > { %3008 = vmatpush.bf16.msrb.mxu0 %v4333_v30  ;;  %3019 = vmatpush.bf16.msrb.mxu1 %v4421_v47  ;;  %v1654_v47 = vperm.slane %v6019_v57, 2 }
 0x211   : > { %v2309_v36 = vpop.f32.mrf.mxu3  ;;  %2993 = vmatpush.bf16.msra.mxu3 %v4277_v35 }
 0x212   : > { %v2310_v19 = vadd.f32 %v2309_v36, %v1652_v5 }
 0x215   : > { %2994 = vmatpush.bf16.msra.mxu3 %v4269_v7  ;;  %v4325_v7 = vor.u32 %v4746_v41, %v4322_v44  ;;  %v4378_v44 = vld [vmem:[%s5440_s5 + $0x118] sm:$0xf0] }
 0x217   : > { %3009 = vmatpush.bf16.msrb.mxu0 %v4325_v7 }
 0x219   : > { %v6005_v40 = vpop.f32.mrf.mxu0  ;;  %v2311_v60 = vpop.f32.mrf.mxu3  ;;  %2995 = vmatpush.bf16.msra.mxu3 %v4261_v54  ;;  %v4314_v54 = vld [vmem:[%s5440_s5 + $0x98] sm:$0xf0] }
 0x21a   : > { %v2324_v28 = vadd.f32 %v6005_v40, %v2310_v19  ;;  %v2312_v35 = vadd.f32 %v2311_v60, %v1652_v5  ;;  %v4481_v40 = vor.u32 %v4787_v38, %v4480_v37  ;;  %v4317_v59 = vor.u32 %v4744_v53, %v4314_v54  ;;  %v4410_v60 = vld [vmem:[%s5440_s5 + $0x158] sm:$0xf0]  ;;  %v4766_v5 = vld [vmem:[%s5440_s5 + $0x144] sm:$0xf]  ;;  %v4781_v19 = vld [vmem:[%s5440_s5 + $0x1b4] sm:$0xf0] }
 0x21b   : > { %v4413_v62 = vor.u32 %v4768_v55, %v4410_v60  ;;  %v4405_v13 = vor.u32 %v4766_v5, %v4402_v11  ;;  %v4457_v21 = vor.u32 %v4781_v19, %v4456_v18  ;;  %v4440_v37 = vld [vmem:[%s5440_s5 + $0x190] sm:$0xf]  ;;  %v4777_v38 = vld [vmem:[%s5440_s5 + $0x194] sm:$0xf0]  ;;  %v4370_v53 = vld [vmem:[%s5440_s5 + $0x108] sm:$0xf0] }
 0x21c   : > { %2977 = vmatpush.bf16.msra.mxu2 %v4481_v40  ;;  %3010 = vmatpush.bf16.msrb.mxu0 %v4317_v59  ;;  %v4441_v41 = vor.u32 %v4777_v38, %v4440_v37  ;;  %v4788_v54 = vld [vmem:[%s5440_s5 + $0x1f4] sm:$0xf]  ;;  %v4490_v59 = vld [vmem:[%s5440_s5 + $0x1f8] sm:$0xf0]  ;;  %v4774_v38 = vld [vmem:[%s5440_s5 + $0x184] sm:$0xf] }
 0x21d   : > { %2996 = vmatpush.bf16.msra.mxu3 %v4253_v46  ;;  %3020 = vmatpush.bf16.msrb.mxu1 %v4413_v62  ;;  %v4493_v60 = vor.u32 %v4788_v54, %v4490_v59  ;;  %v4474_v11 = vld [vmem:[%s5440_s5 + $0x1d8] sm:$0xf0] }
 0x220   : > { %2978 = vmatpush.bf16.msra.mxu2 %v4473_v45  ;;  %v4758_v45 = vld [vmem:[%s5440_s5 + $0x104] sm:$0xf] }
 0x221   : > { %v2325_v3 = vpop.f32.mrf.mxu0  ;;  %2997 = vmatpush.bf16.msra.mxu3 %v4245_v15  ;;  %v2365_v33 = vpop.f32.mrf.mxu3  ;;  %3021 = vmatpush.bf16.msrb.mxu1 %v4405_v13 }
 0x222   : > { %v2326_v16 = vadd.f32 %v2325_v3, %v2312_v35  ;;  %v4742_v3 = vld [vmem:[%s5440_s5 + $0x84] sm:$0xf]  ;;  %v4389_v35 = vor.u32 %v4762_v32, %v4386_v14 }
 0x223   : > { %v4309_v10 = vor.u32 %v4742_v3, %v4306_v4 }
 0x224   : > { %2979 = vmatpush.bf16.msra.mxu2 %v4465_v2 }
 0x225   : > { %3011 = vmatpush.bf16.msrb.mxu0 %v4309_v10  ;;  %v4784_v10 = vld [vmem:[%s5440_s5 + $0x1d4] sm:$0xf] }
 0x228   : > { %v2337_v61 = vpop.f32.mrf.mxu1  ;;  %2980 = vmatpush.bf16.msra.mxu2 %v4457_v21 }
 0x229   : > { %v2338_v36 = vadd.f32 %v2337_v61, %v2324_v28  ;;  %v2379_v39 = vpop.f32.mrf.mxu0  ;;  %v1653_v61 = vperm.slane %v6019_v57, 1  ;;  %v2367_v46 = vpop.f32.mrf.mxu3  ;;  %v4448_v28 = vld [vmem:[%s5440_s5 + $0x1a0] sm:$0xf] }
 0x22a   : > { %v4449_v30 = vor.u32 %v4779_v29, %v4448_v28  ;;  %v4778_v29 = vld [vmem:[%s5440_s5 + $0x1a4] sm:$0xf] }
 0x22b   : > { %v2366_v15 = vadd.f32 %v2365_v33, %v1653_v61  ;;  %v2368_v26 = vadd.f32 %v2367_v46, %v1653_v61  ;;  %v4482_v46 = vld [vmem:[%s5440_s5 + $0x1e8] sm:$0xf0] }
 0x22c   : > { %2981 = vmatpush.bf16.msra.mxu2 %v4449_v30  ;;  %v4485_v3 = vor.u32 %v4786_v1, %v4482_v46  ;;  %v4450_v30 = vld [vmem:[%s5440_s5 + $0x1a8] sm:$0xf0] }
 0x22d   : > { %v2380_v24 = vadd.f32 %v2379_v39, %v2366_v15  ;;  %v4760_v39 = vld [vmem:[%s5440_s5 + $0x114] sm:$0xf]  ;;  %v4477_v15 = vor.u32 %v4784_v10, %v4474_v11  ;;  %v4453_v14 = vor.u32 %v4778_v29, %v4450_v30 }
 0x230   : > { %v2339_v22 = vpop.f32.mrf.mxu1  ;;  %v2351_v23 = vpop.f32.mrf.mxu2  ;;  %2982 = vmatpush.bf16.msra.mxu2 %v4441_v41  ;;  %v1655_v41 = vperm.slane %v6019_v57, 3 }
 0x231   : > { %v2352_v42 = vadd.f32 %v2351_v23, %v2338_v36  ;;  %v2340_v48 = vadd.f32 %v2339_v22, %v2326_v16  ;;  %v2381_v12 = vpop.f32.mrf.mxu0  ;;  %v4764_v22 = vld [vmem:[%s5440_s5 + $0x134] sm:$0xf]  ;;  %v4394_v23 = vld [vmem:[%s5440_s5 + $0x138] sm:$0xf0]  ;;  %v2421_v36 = vpop.f32.mrf.mxu3 }
 0x232   : > { %v4397_v25 = vor.u32 %v4764_v22, %v4394_v23  ;;  %v2382_v33 = vadd.f32 %v2381_v12, %v2368_v26  ;;  %v2422_v61 = vadd.f32 %v2421_v36, %v1654_v47 }
 0x233   : > { %v2524_v56 = vmul.f32 0.1, %v2352_v42 }
 0x234   : > { %3022 = vmatpush.bf16.msrb.mxu1 %v4397_v25  ;;  %v4458_v25 = vld [vmem:[%s5440_s5 + $0x1b8] sm:$0xf0] }
 0x235   : > { %v2532_v8 = vmax.f32 %v2352_v42, %v2524_v56  ;;  %v4381_v42 = vor.u32 %v4760_v39, %v4378_v44  ;;  %v4434_v39 = vld [vmem:[%s5440_s5 + $0x188] sm:$0xf0] }
 0x236   : > { %v4437_v44 = vor.u32 %v4774_v38, %v4434_v39 }
 0x238   : > { %v2353_v51 = vpop.f32.mrf.mxu2  ;;  %v2393_v52 = vpop.f32.mrf.mxu1  ;;  %3023 = vmatpush.bf16.msrb.mxu1 %v4389_v35 }
 0x239   : > { %v2354_v58 = vadd.f32 %v2353_v51, %v2340_v48  ;;  %v2394_v27 = vadd.f32 %v2393_v52, %v2380_v24  ;;  %v2435_v6 = vpop.f32.mrf.mxu0  ;;  %v4775_v51 = vld [vmem:[%s5440_s5 + $0x184] sm:$0xf0]  ;;  %v4780_v24 = vld [vmem:[%s5440_s5 + $0x1b4] sm:$0xf] }
 0x23a   : > { %v4433_v52 = vor.u32 %v4775_v51, %v4432_v50  ;;  %v2436_v2 = vadd.f32 %v2435_v6, %v2422_v61  ;;  %v4461_v28 = vor.u32 %v4780_v24, %v4458_v25 }
 0x23b   : > { %v2528_v63 = vmul.f32 0.1, %v2354_v58 }
 0x23c   : > { %3024 = vmatpush.bf16.msrb.mxu1 %v4381_v42  ;;  %2983 = vmatpush.bf16.msra.mxu2 %v4433_v52 }
 0x23d   : > { %v2536_v9 = vmax.f32 %v2354_v58, %v2528_v63  ;;  %v4373_v58 = vor.u32 %v4758_v45, %v4370_v53  ;;  %v2423_v63 = vpop.f32.mrf.mxu3 }
 0x23e   : > { %v2424_v5 = vadd.f32 %v2423_v63, %v1654_v47 }
 0x23f   : > { %v6062_v17 = vpack.c.bf16 %v2536_v9, %v2532_v8 }
 0x240   : > { %v2395_v31 = vpop.f32.mrf.mxu1  ;;  %v2407_v20 = vpop.f32.mrf.mxu2  ;;  %3025 = vmatpush.bf16.msrb.mxu1 %v4373_v58  ;;  %3032 = vmatpush.bf16.msrb.mxu2 %v4493_v60  ;;  %v2608_v60 = vld [vmem:[%s559_s22] sm:$0x3] }
 0x241   : > { %2942 = vmatmul.bf16.vlgmr.msrb.gmra.mxu3 %v6062_v17  ;;  %v2408_v34 = vadd.f32 %v2407_v20, %v2394_v27  ;;  %v2396_v40 = vadd.f32 %v2395_v31, %v2382_v33  ;;  %v2437_v4 = vpop.f32.mrf.mxu0  ;;  %v4466_v31 = vld [vmem:[%s5440_s5 + $0x1c8] sm:$0xf0]  ;;  %v4776_v33 = vld [vmem:[%s5440_s5 + $0x194] sm:$0xf]  ;;  %v2610_v63 = vperm.slane %v2608_v60, 0 }
 0x242   : > { %v2438_v12 = vadd.f32 %v2437_v4, %v2424_v5 }
 0x243   : > { %v2525_v7 = vmul.f32 0.1, %v2408_v34 }
 0x244   : > { %3033 = vmatpush.bf16.msrb.mxu2 %v4485_v3 }
 0x245   : > { %v2533_v55 = vmax.f32 %v2408_v34, %v2525_v7  ;;  %v4442_v34 = vld [vmem:[%s5440_s5 + $0x198] sm:$0xf0] }
 0x246   : > { %v4445_v36 = vor.u32 %v4776_v33, %v4442_v34 }
 0x248   : > { %v2409_v16 = vpop.f32.mrf.mxu2  ;;  %v2449_v48 = vpop.f32.mrf.mxu1  ;;  %3034 = vmatpush.bf16.msrb.mxu2 %v4477_v15 }
 0x249   : > { %v2410_v43 = vadd.f32 %v2409_v16, %v2396_v40  ;;  %v2450_v8 = vadd.f32 %v2449_v48, %v2436_v2 }
 0x24b   : > { %v2529_v49 = vmul.f32 0.1, %v2410_v43 }
 0x24d   : > { %v2537_v56 = vmax.f32 %v2410_v43, %v2529_v49 }
 0x24f   : > { %v2541_v62 = vpack.c.bf16 %v2537_v56, %v2533_v55 }
 0x250   : > { %v2463_v0 = vpop.f32.mrf.mxu2  ;;  %v2451_v9 = vpop.f32.mrf.mxu1 }
 0x251   : > { %2956 = vmatmul.bf16.vlgmr.msra.gmra.mxu0 %v2541_v62  ;;  %2998 = vmatmul.bf16.vlgmr.msra.gmra.mxu3 %v6062_v17  ;;  %v2464_v13 = vadd.f32 %v2463_v0, %v2450_v8  ;;  %v2452_v18 = vadd.f32 %v2451_v9, %v2438_v12  ;;  %v4782_v17 = vld [vmem:[%s5440_s5 + $0x1c4] sm:$0xf]  ;;  %v2477_v35 = vpop.f32.mrf.mxu3  ;;  %v2611_v12 = vperm.slane %v2608_v60, 1  ;;  %s3066_s5 = sshll.u32 %s6102_s11, 4  ;;  %s3067_s5 = int_to_ptr.vmem [resolvable:$true] %s3066_s5 }
 0x252   : > { %v4469_v22 = vor.u32 %v4782_v17, %v4466_v31  ;;  %v2478_v6 = vadd.f32 %v2477_v35, %v1655_v41 }
 0x253   : > { %v2526_v20 = vmul.f32 0.1, %v2464_v13 }
 0x254   : > { %3035 = vmatpush.bf16.msrb.mxu2 %v4469_v22 }
 0x255   : > { %v2534_v26 = vmax.f32 %v2464_v13, %v2526_v20 }
 0x258   : > { %v2465_v19 = vpop.f32.mrf.mxu2  ;;  %3036 = vmatpush.bf16.msrb.mxu2 %v4461_v28 }
 0x259   : > { %v2466_v21 = vadd.f32 %v2465_v19, %v2452_v18  ;;  %v2491_v37 = vpop.f32.mrf.mxu0  ;;  %v2479_v16 = vpop.f32.mrf.mxu3 }
 0x25a   : > { %v2492_v7 = vadd.f32 %v2491_v37, %v2478_v6  ;;  %v2480_v47 = vadd.f32 %v2479_v16, %v1655_v41 }
 0x25b   : > { %v2530_v23 = vmul.f32 0.1, %v2466_v21 }
 0x25c   : > { %3037 = vmatpush.bf16.msrb.mxu2 %v4453_v14 }
 0x25d   : > { %v2538_v27 = vmax.f32 %v2466_v21, %v2530_v23 }
 0x25f   : > { %v2542_v32 = vpack.c.bf16 %v2538_v27, %v2534_v26 }
 0x260   : > { %3038 = vmatpush.bf16.msrb.mxu2 %v4445_v36 }
 0x261   : > { %2970 = vmatmul.bf16.vlgmr.msra.gmra.mxu1 %v2542_v32  ;;  %3012 = vmatmul.bf16.vlgmr.msrb.gmra.mxu0 %v2541_v62  ;;  %v2493_v43 = vpop.f32.mrf.mxu0 }
 0x262   : > { %v2494_v50 = vadd.f32 %v2493_v43, %v2480_v47 }
 0x264   : > { %3039 = vmatpush.bf16.msrb.mxu2 %v4437_v44 }
 0x268   : > { %v2505_v40 = vpop.f32.mrf.mxu1 }
 0x269   : > { %v2506_v48 = vadd.f32 %v2505_v40, %v2492_v7 }
 0x270   : > { %v2519_v42 = vpop.f32.mrf.mxu2  ;;  %v2507_v49 = vpop.f32.mrf.mxu1 }
 0x271   : > { %3026 = vmatmul.bf16.vlgmr.msrb.gmra.mxu1 %v2542_v32  ;;  %v2520_v51 = vadd.f32 %v2519_v42, %v2506_v48  ;;  %v2508_v52 = vadd.f32 %v2507_v49, %v2494_v50 }
 0x273   : > { %v2527_v53 = vmul.f32 0.1, %v2520_v51 }
 0x275   : > { %v2535_v55 = vmax.f32 %v2520_v51, %v2527_v53 }
 0x278   : > { %v2521_v45 = vpop.f32.mrf.mxu2 }
 0x279   : > { %v2522_v54 = vadd.f32 %v2521_v45, %v2508_v52 }
 0x27b   : > { %v2531_v57 = vmul.f32 0.1, %v2522_v54 }
 0x27d   : > { %v2539_v56 = vmax.f32 %v2522_v54, %v2531_v57 }
 0x27f   : > { %v2543_v58 = vpack.c.bf16 %v2539_v56, %v2535_v55 }
 0x281   : > { %2984 = vmatmul.bf16.vlgmr.msra.gmra.mxu2 %v2543_v58 }
 0x291   : > { %3040 = vmatmul.bf16.vlgmr.msrb.gmra.mxu2 %v2543_v58 }
 0x2c4   : > { %v2943_v59 = vpop.f32.mrf.mxu3 }
 0x2c5   : > { %v2944_v0 = vadd.f32 %v2943_v59, %v2610_v63 }
 0x2cc   : > { %v2945_v1 = vpop.f32.mrf.mxu3 }
 0x2cd   : > { %v2946_v9 = vadd.f32 %v2945_v1, %v2610_v63 }
 0x2ce   : > { %v2957_v61 = vpop.f32.mrf.mxu0 }
 0x2cf   : > { %v2958_v46 = vadd.f32 %v2957_v61, %v2944_v0 }
 0x2d4   : > { %v2999_v11 = vpop.f32.mrf.mxu3 }
 0x2d5   : > { %v3000_v31 = vadd.f32 %v2999_v11, %v2611_v12 }
 0x2d6   : > { %v2959_v2 = vpop.f32.mrf.mxu0 }
 0x2d7   : > { %v2960_v10 = vadd.f32 %v2959_v2, %v2946_v9 }
 0x2dc   : > { %v3001_v22 = vpop.f32.mrf.mxu3 }
 0x2dd   : > { %v3002_v26 = vadd.f32 %v3001_v22, %v2611_v12 }
 0x2de   : > { %v2971_v62 = vpop.f32.mrf.mxu1  ;;  %v3013_v15 = vpop.f32.mrf.mxu0 }
 0x2df   : > { %v2972_v3 = vadd.f32 %v2971_v62, %v2958_v46  ;;  %v3014_v20 = vadd.f32 %v3013_v15, %v3000_v31 }
 0x2e6   : > { %v2973_v4 = vpop.f32.mrf.mxu1  ;;  %v3015_v25 = vpop.f32.mrf.mxu0 }
 0x2e7   : > { %v2974_v13 = vadd.f32 %v2973_v4, %v2960_v10  ;;  %v3016_v28 = vadd.f32 %v3015_v25, %v3002_v26 }
 0x2ee   : > { %v3027_v17 = vpop.f32.mrf.mxu1 }
 0x2ef   : > { %v3028_v21 = vadd.f32 %v3027_v17, %v3014_v20 }
 0x2f6   : > { %v3029_v27 = vpop.f32.mrf.mxu1 }
 0x2f7   : > { %v3030_v29 = vadd.f32 %v3029_v27, %v3016_v28 }
 0x304   : > { %v2985_v5 = vpop.f32.mrf.mxu2 }
 0x305   : > { %v2986_v8 = vadd.f32 %v2985_v5, %v2972_v3 }
 0x307   : > { %3046 = vst [vmem:[%s6102_s11] sm:$0xff] %v2986_v8 }
 0x30c   : > { %v2987_v18 = vpop.f32.mrf.mxu2 }
 0x30d   : > { %v2988_v19 = vadd.f32 %v2987_v18, %v2974_v13 }
 0x30f   : > { %3048 = vst [vmem:[%s6102_s11 + $0x10] sm:$0xff] %v2988_v19 }
 0x314   : > { %v3041_v23 = vpop.f32.mrf.mxu2 }
 0x315   : > { %v3042_v24 = vadd.f32 %v3041_v23, %v3028_v21 }
 0x317   : > { %3047 = vst [vmem:[%s6102_s11 + $0x8] sm:$0xff] %v3042_v24 }
 0x31c   : > { %v3043_v30 = vpop.f32.mrf.mxu2 }
 0x31d   : > { %v3044_v32 = vadd.f32 %v3043_v30, %v3030_v29 }
 0x31f   : > { %3049 = vst [vmem:[%s6102_s11 + $0x18] sm:$0xff] %v3044_v32 }
 0x320   : > { %5133 = shalt.err (!%p5130_p12)
}
 0x321   : > { %s5206_s9 = smov 256   ;;  %s5207_s28 = smov 16  }
 0x322   : > { %4812 = dma.vmem_to_hbm [thread:$0]  (%p5313_p9), %s3067_s5, 512, %s3069_s20, %s3051_s12, %s5206_s9, %s5206_s9, %s5207_s28  }
 0x323 PF: > { %s6193_s17 = sld [smem:[#allocation22_spill]] }
 0x324   : > { %s6194_s21 = sld [smem:[#allocation20_spill]] }
 0x329   : > { %p4841_p13 = scmp.ge.s32.totalorder %s6193_s17, 2 }
 0x32a   : > { %s3083_s22 = sand.u32 1, %s6194_s21  }
 0x32b   : > { %p4837_p0 = pnand %p4841_p13, %p5320_p11  ;;  %s3084_s18 = scalar_lea.sflag [#allocation4], %s3083_s22 }
 0x32d   : > { %p4838_p1 = pneg %p4837_p0 }
 0x32f   : > { %5175 = dma.done.wait (%p4838_p1), %s3084_s18, 512  }
 0x330   : > { %5177 = vsyncadd (%p4838_p1), %s3084_s18, 4294966784  ;;  %s34_s14 = sadd.s32 1, %s6193_s17   ;;  %s6196_s11 = sld [smem:[#allocation21_spill]] }
 0x331   : > { %p31_p2 = scmp.ge.s32.totalorder %s34_s14, 6   ;;  %s6197_s27 = sld [smem:[#allocation25_spill]] }
 0x332   : > { %s6198_s23 = sld [smem:[#allocation23_spill]]  ;;  %s6199_s30 = smov %s5184_s10 }
 0x333   : > { %s6202_s12 = smov %s5196_s13 }
 0x334   :  { %33 = sbr.rel (!%p31_p2) target bundleno = 18 (0x12), region = 179 }
 0x336   : > { %s6200_s10 = smov %s6196_s11 }
 0x337   : > { %s6201_s11 = smov %s6197_s27 }
 0x338   : > { %s6203_s13 = smov %s6198_s23 }
 0x339   :  { %3090 = vsyncpa [#allocation3], 1 }
 0x33a   :  { %3092 = vsyncpa [#allocation3 + $0x1], 1 }
 0x33b   :  { %3093 = vsyncpa [#allocation6], 1 }
 0x33c   :  { %3095 = vsyncpa [#allocation6 + $0x1], 1 }
 0x33d   :  { %3096 = vsyncpa [#allocation9], 1 }
 0x33e   :  { %3098 = vsyncpa [#allocation9 + $0x1], 1 }
 0x33f   :  { %3099 = vsyncpa [#allocation12], 1 }
 0x340   :  { %3101 = vsyncpa [#allocation12 + $0x1], 1 }
 0x341   :  { %3102 = vsyncpa [#allocation4], 1 }
 0x342   :  { %3104 = vsyncpa [#allocation4 + $0x1], 1 }

</bundles_post_ra>
